<compile_context>
chip_gen: v7x
topology: tpu7x:2x2x1
jax: 0.10.0
libtpu: 0.0.40
codegen_flags: <defaults>
</compile_context>

<pallas_src>
import math

import jax
import jax.numpy as jnp
from jax.experimental import pallas as pl
from jax.experimental.pallas import tpu as pltpu


_LANE = 128     # lane width: last dim multiple
_SUBLANE = 8    # sublane: second-to-last dim multiple (f32)


def _round_up(x, m):
    return ((x + m - 1) // m) * m


# ---------------------------------------------------------------------------
# Fused kernel: GEM weight de-compression (once, at t==0) + time-blocked
# spiking-MLP recurrence. Membrane state and the de-compressed weights live in
# VMEM scratch and persist across grid iterations (time axis = "arbitrary").
# ---------------------------------------------------------------------------
def _make_spiking_gem_kernel(n_layers, time_block, batch_pad, sizes_pad,
                             beta, threshold=1.0):
    n_xs = n_layers + 1

    def kernel(*refs):
        x_ref = refs[0]                         # (TB, B, in_pad)
        xs_refs = refs[1:1 + n_xs]              # each (size_pad_i, num_genes)
        o_ref = refs[1 + n_xs]                  # (num_genes, num_genes)
        spk_out_ref = refs[2 + n_xs]            # (TB, B, last_pad)
        mem_out_ref = refs[3 + n_xs]            # (TB, B, last_pad)
        scratch = refs[4 + n_xs:]
        w_refs = scratch[:n_layers]             # W_l: (size_pad_l, size_pad_{l+1})
        mem_refs = scratch[n_layers:]           # mem_l: (B, size_pad_{l+1})

        @pl.when(pl.program_id(0) == 0)
        def _init():
            # GEM de-compression, fused: W_l = X_l @ O @ X_{l+1}^T.
            o = o_ref[...]
            for i in range(n_layers):
                xo = jnp.dot(xs_refs[i][...], o,
                             preferred_element_type=jnp.float32)
                # dot_general with trans_b semantics: no explicit transpose.
                w_refs[i][...] = jax.lax.dot_general(
                    xo, xs_refs[i + 1][...],
                    dimension_numbers=(((1,), (1,)), ((), ())),
                    preferred_element_type=jnp.float32)
                # lif.init_leaky() -> zero membranes.
                mem_refs[i][...] = jnp.zeros_like(mem_refs[i])

        # Layer-0 currents for the whole time block as one matmul
        # (only layer 0's input spikes are known ahead of the recurrence).
        x_blk = x_ref[...]                                       # (TB, B, in)
        cur0 = jnp.dot(
            x_blk.reshape(time_block * batch_pad, sizes_pad[0]),
            w_refs[0][...],
            preferred_element_type=jnp.float32,
        ).reshape(time_block, batch_pad, sizes_pad[1])

        for s in range(time_block):             # unrolled time sub-loop
            spk = None
            mem = None
            for i in range(n_layers):
                if i == 0:
                    cur = cur0[s]
                else:
                    cur = jnp.dot(spk, w_refs[i][...],
                                  preferred_element_type=jnp.float32)
                mem_prev = mem_refs[i][...]
                reset = (mem_prev > threshold).astype(jnp.float32)
                mem = (1.0 - reset) * (beta * mem_prev + cur)
                mem_refs[i][...] = mem
                spk = (mem > threshold).astype(jnp.float32)
            spk_out_ref[s] = spk                # final-layer spikes, step s
            mem_out_ref[s] = mem                # final-layer membrane, step s
        # TODO(synk): per-layer spike records (self.spks) are a side attribute
        # in the PyTorch module, not a returned value; not materialized here.

    return kernel


def spiking_gem_forward(x, Xs, O, *, beta=0.95, threshold=1.0, time_block=8):
    """x: (batch, num_steps, layer_sizes[0]) float32, PyTorch convention."""
    batch, num_steps, in_size = x.shape
    n_layers = len(Xs) - 1
    assert n_layers >= 1, "need at least one layer (two X factors)"
    g = O.shape[0]
    sizes = [int(X.shape[0]) for X in Xs]
    assert sizes[0] == in_size

    # Pad feature dims to lane multiples and batch to a sublane multiple.
    # Zero padding is exact: padded rows/cols of W are zero, padded membranes
    # stay zero, padded spikes stay zero.
    sizes_pad = [_round_up(s, _LANE) for s in sizes]
    batch_pad = _round_up(batch, _SUBLANE)
    tb = max(1, min(time_block, num_steps))
    t_pad = _round_up(num_steps, tb)
    last = sizes[-1]
    last_pad = sizes_pad[-1]

    # Pad genotype factors with zero rows.
    xs_pad = [
        jnp.zeros((sp, g), jnp.float32).at[:s, :].set(X.astype(jnp.float32))
        for X, s, sp in zip(Xs, sizes, sizes_pad)
    ]

    # Time-major, padded input: (t_pad, batch_pad, in_pad).
    xt = jnp.transpose(x.astype(jnp.float32), (1, 0, 2))
    x_pad = jnp.zeros((t_pad, batch_pad, sizes_pad[0]), jnp.float32)
    x_pad = x_pad.at[:num_steps, :batch, :in_size].set(xt)

    in_specs = [pl.BlockSpec((tb, batch_pad, sizes_pad[0]),
                             lambda t: (t, 0, 0))]
    for sp in sizes_pad:
        in_specs.append(pl.BlockSpec((sp, g), lambda t: (0, 0)))
    in_specs.append(pl.BlockSpec((g, g), lambda t: (0, 0)))

    out_specs = [
        pl.BlockSpec((tb, batch_pad, last_pad), lambda t: (t, 0, 0)),
        pl.BlockSpec((tb, batch_pad, last_pad), lambda t: (t, 0, 0)),
    ]
    out_shape = (
        jax.ShapeDtypeStruct((t_pad, batch_pad, last_pad), jnp.float32),
        jax.ShapeDtypeStruct((t_pad, batch_pad, last_pad), jnp.float32),
    )
    scratch = (
        [pltpu.VMEM((sizes_pad[i], sizes_pad[i + 1]), jnp.float32)
         for i in range(n_layers)]          # de-compressed weights, resident
        + [pltpu.VMEM((batch_pad, sizes_pad[i + 1]), jnp.float32)
           for i in range(n_layers)]        # membrane state, carried over time
    )
    # NOTE: for large layer sizes, raise vmem_limit_bytes via
    # pltpu.CompilerParams(vmem_limit_bytes=...) and/or tile the per-layer
    # matmul; the demo configuration fits comfortably in the default budget.

    kernel = _make_spiking_gem_kernel(n_layers, tb, batch_pad, sizes_pad,
                                      beta, threshold)
    spk_pad, mem_pad = pl.pallas_call(
        kernel,
        out_shape=out_shape,
        grid_spec=pltpu.PrefetchScalarGridSpec(
            num_scalar_prefetch=0,
            grid=(t_pad // tb,),
            in_specs=in_specs,
            out_specs=out_specs,
            scratch_shapes=scratch,
        ),
        compiler_params=pltpu.CompilerParams(
            dimension_semantics=("arbitrary",)),  # carried membrane state
    )(x_pad, *xs_pad, O.astype(jnp.float32))

    spk_rec = spk_pad[:num_steps, :batch, :last]
    mem_rec = mem_pad[:num_steps, :batch, :last]
    return spk_rec, mem_rec


# ---------------------------------------------------------------------------
# Pure-JAX reference (mirrors the PyTorch forward exactly) for verification.
# ---------------------------------------------------------------------------
def reference_forward(x, Xs, O, *, beta=0.95, threshold=1.0):
    Ws = [Xs[i] @ O @ Xs[i + 1].T for i in range(len(Xs) - 1)]
    batch, num_steps, _ = x.shape
    mems = [jnp.zeros((batch, W.shape[1]), jnp.float32) for W in Ws]
    spk_rec, mem_rec = [], []
    for step in range(num_steps):
        spk = x[:, step]
        for i, W in enumerate(Ws):
            cur = spk @ W
            reset = (mems[i] > threshold).astype(jnp.float32)
            mem = (1.0 - reset) * (beta * mems[i] + cur)
            spk = (mem > threshold).astype(jnp.float32)
            mems[i] = mem
        spk_rec.append(spk)
        mem_rec.append(mems[-1])
    return jnp.stack(spk_rec, 0), jnp.stack(mem_rec, 0)


if __name__ == "__main__":
    # Small, deterministic configuration.
    layer_sizes = [16, 32, 8]
    num_genes = 4
    batch = 2
    num_steps = 8
    beta = 0.95

    key = jax.random.PRNGKey(0)
    keys = jax.random.split(key, len(layer_sizes) + 2)

    # Xs[i]: (size_i, num_genes), kaiming_normal_(X.T, fan_out=num_genes)
    #   -> std = sqrt(2 / num_genes)
    Xs = [
        jax.random.normal(keys[i], (s, num_genes), jnp.float32)
        * math.sqrt(2.0 / num_genes)
        for i, s in enumerate(layer_sizes)
    ]
    # O = randn(num_genes, num_genes) / num_genes
    O = jax.random.normal(keys[-2], (num_genes, num_genes), jnp.float32) / num_genes

    # Input spikes: (batch, num_steps, layer_sizes[0]), PyTorch convention.
    x = jax.random.bernoulli(
        keys[-1], 0.5, (batch, num_steps, layer_sizes[0])
    ).astype(jnp.float32)

    # time_block=4 -> grid of 2 time blocks, exercising cross-block membrane
    # carry and the pl.when(t == 0) weight/state initialization.
    spk_rec, mem_rec = spiking_gem_forward(x, Xs, O, beta=beta, time_block=4)
    spk_rec = jax.block_until_ready(spk_rec)
    mem_rec = jax.block_until_ready(mem_rec)

    spk_ref, mem_ref = reference_forward(x, Xs, O, beta=beta)

    assert spk_rec.shape == (num_steps, batch, layer_sizes[-1])
    assert mem_rec.shape == (num_steps, batch, layer_sizes[-1])
    assert jnp.allclose(mem_rec, mem_ref, atol=1e-4, rtol=1e-4)
    assert jnp.allclose(spk_rec, spk_ref, atol=1e-4, rtol=1e-4)

    print("KERNEL_OK")
</pallas_src>

<mosaic_0001>
module attributes {stable_mosaic.version = 11 : i64} {
  func.func @kernel(%arg0: i32, %arg1: memref<4x8x128xf32, #tpu.memory_space<vmem>>, %arg2: memref<128x4xf32, #tpu.memory_space<vmem>>, %arg3: memref<128x4xf32, #tpu.memory_space<vmem>>, %arg4: memref<128x4xf32, #tpu.memory_space<vmem>>, %arg5: memref<4x4xf32, #tpu.memory_space<vmem>>, %arg6: memref<4x8x128xf32, #tpu.memory_space<vmem>>, %arg7: memref<4x8x128xf32, #tpu.memory_space<vmem>>, %arg8: memref<128x128xf32, #tpu.memory_space<vmem>>, %arg9: memref<128x128xf32, #tpu.memory_space<vmem>>, %arg10: memref<8x128xf32, #tpu.memory_space<vmem>>, %arg11: memref<8x128xf32, #tpu.memory_space<vmem>>) attributes {dimension_semantics = [#tpu.dimension_semantics<arbitrary>], iteration_bounds = array<i64: 2>, scalar_prefetch = 0 : i64, scratch_operands = 4 : i64, tpu.core_type = #tpu.core_type<tc>, window_params = [{transform_indices = @transform_0, window_bounds = array<i64: 4, 8, 128>}, {pipeline_mode = #tpu.pipeline_mode<synchronous>, transform_indices = @transform_1, window_bounds = array<i64: 128, 4>}, {pipeline_mode = #tpu.pipeline_mode<synchronous>, transform_indices = @transform_2, window_bounds = array<i64: 128, 4>}, {pipeline_mode = #tpu.pipeline_mode<synchronous>, transform_indices = @transform_3, window_bounds = array<i64: 128, 4>}, {pipeline_mode = #tpu.pipeline_mode<synchronous>, transform_indices = @transform_4, window_bounds = array<i64: 4, 4>}, {transform_indices = @transform_5, window_bounds = array<i64: 4, 8, 128>}, {transform_indices = @transform_6, window_bounds = array<i64: 4, 8, 128>}]} {
    %c0_i32 = arith.constant 0 : i32
    %0 = arith.cmpi eq, %arg0, %c0_i32 : i32
    %1 = arith.extui %0 : i1 to i32
    %c0_i32_0 = arith.constant 0 : i32
    %2 = arith.cmpi ne, %1, %c0_i32_0 : i32
    scf.if %2 {
      %c0_102 = arith.constant 0 : index
      %c0_103 = arith.constant 0 : index
      %176 = vector.load %arg5[%c0_102, %c0_103] : memref<4x4xf32, #tpu.memory_space<vmem>>, vector<4x4xf32>
      %c0_104 = arith.constant 0 : index
      %c0_105 = arith.constant 0 : index
      %177 = vector.load %arg2[%c0_104, %c0_105] : memref<128x4xf32, #tpu.memory_space<vmem>>, vector<128x4xf32>
      %cst_106 = arith.constant dense<0.000000e+00> : vector<128x4xf32>
      %178 = tpu.matmul %177, %176, %cst_106 {dimension_numbers = #tpu.dot_dimension_numbers<[1], [0], [0], [1], [0, 0, 1, 1], [], []>} : vector<128x4xf32>, vector<4x4xf32>, vector<128x4xf32> -> vector<128x4xf32>
      %c0_107 = arith.constant 0 : index
      %c0_108 = arith.constant 0 : index
      %179 = vector.load %arg3[%c0_107, %c0_108] : memref<128x4xf32, #tpu.memory_space<vmem>>, vector<128x4xf32>
      %cst_109 = arith.constant dense<0.000000e+00> : vector<128x128xf32>
      %180 = tpu.matmul %178, %179, %cst_109 {dimension_numbers = #tpu.dot_dimension_numbers<[1], [1], [0], [0], [0, 0, 1, 0], [], []>} : vector<128x4xf32>, vector<128x4xf32>, vector<128x128xf32> -> vector<128x128xf32>
      %c0_110 = arith.constant 0 : index
      %c0_111 = arith.constant 0 : index
      %181 = vector.load %arg8[%c0_110, %c0_111] : memref<128x128xf32, #tpu.memory_space<vmem>>, vector<128x128xf32>
      tpu.vector_store %arg8[%c0_110, %c0_111], %180 {strides = array<i32>} : memref<128x128xf32, #tpu.memory_space<vmem>>, vector<128x128xf32>,
      %cst_112 = arith.constant 0.000000e+00 : f32
      %182 = vector.broadcast %cst_112 : f32 to vector<8x128xf32>
      %c0_113 = arith.constant 0 : index
      %c0_114 = arith.constant 0 : index
      %183 = vector.load %arg10[%c0_113, %c0_114] : memref<8x128xf32, #tpu.memory_space<vmem>>, vector<8x128xf32>
      tpu.vector_store %arg10[%c0_113, %c0_114], %182 {strides = array<i32>} : memref<8x128xf32, #tpu.memory_space<vmem>>, vector<8x128xf32>,
      %c0_115 = arith.constant 0 : index
      %c0_116 = arith.constant 0 : index
      %184 = vector.load %arg3[%c0_115, %c0_116] : memref<128x4xf32, #tpu.memory_space<vmem>>, vector<128x4xf32>
      %cst_117 = arith.constant dense<0.000000e+00> : vector<128x4xf32>
      %185 = tpu.matmul %184, %176, %cst_117 {dimension_numbers = #tpu.dot_dimension_numbers<[1], [0], [0], [1], [0, 0, 1, 1], [], []>} : vector<128x4xf32>, vector<4x4xf32>, vector<128x4xf32> -> vector<128x4xf32>
      %c0_118 = arith.constant 0 : index
      %c0_119 = arith.constant 0 : index
      %186 = vector.load %arg4[%c0_118, %c0_119] : memref<128x4xf32, #tpu.memory_space<vmem>>, vector<128x4xf32>
      %cst_120 = arith.constant dense<0.000000e+00> : vector<128x128xf32>
      %187 = tpu.matmul %185, %186, %cst_120 {dimension_numbers = #tpu.dot_dimension_numbers<[1], [1], [0], [0], [0, 0, 1, 0], [], []>} : vector<128x4xf32>, vector<128x4xf32>, vector<128x128xf32> -> vector<128x128xf32>
      %c0_121 = arith.constant 0 : index
      %c0_122 = arith.constant 0 : index
      %188 = vector.load %arg9[%c0_121, %c0_122] : memref<128x128xf32, #tpu.memory_space<vmem>>, vector<128x128xf32>
      tpu.vector_store %arg9[%c0_121, %c0_122], %187 {strides = array<i32>} : memref<128x128xf32, #tpu.memory_space<vmem>>, vector<128x128xf32>,
      %cst_123 = arith.constant 0.000000e+00 : f32
      %189 = vector.broadcast %cst_123 : f32 to vector<8x128xf32>
      %c0_124 = arith.constant 0 : index
      %c0_125 = arith.constant 0 : index
      %190 = vector.load %arg11[%c0_124, %c0_125] : memref<8x128xf32, #tpu.memory_space<vmem>>, vector<8x128xf32>
      tpu.vector_store %arg11[%c0_124, %c0_125], %189 {strides = array<i32>} : memref<8x128xf32, #tpu.memory_space<vmem>>, vector<8x128xf32>,
    } else {
    }
    %c0 = arith.constant 0 : index
    %c0_1 = arith.constant 0 : index
    %c0_2 = arith.constant 0 : index
    %3 = vector.load %arg1[%c0, %c0_1, %c0_2] : memref<4x8x128xf32, #tpu.memory_space<vmem>>, vector<4x8x128xf32>
    %4 = vector.shape_cast %3 : vector<4x8x128xf32> to vector<32x128xf32>
    %c0_3 = arith.constant 0 : index
    %c0_4 = arith.constant 0 : index
    %5 = vector.load %arg8[%c0_3, %c0_4] : memref<128x128xf32, #tpu.memory_space<vmem>>, vector<128x128xf32>
    %cst = arith.constant dense<0.000000e+00> : vector<32x128xf32>
    %6 = tpu.matmul %4, %5, %cst {dimension_numbers = #tpu.dot_dimension_numbers<[1], [0], [0], [1], [0, 0, 1, 1], [], []>} : vector<32x128xf32>, vector<128x128xf32>, vector<32x128xf32> -> vector<32x128xf32>
    %7 = vector.shape_cast %6 : vector<32x128xf32> to vector<4x8x128xf32>
    %8 = vector.extract_strided_slice %7 {offsets = [0, 0, 0], sizes = [1, 8, 128], strides = [1, 1, 1]} : vector<4x8x128xf32> to vector<1x8x128xf32>
    %9 = vector.shape_cast %8 : vector<1x8x128xf32> to vector<8x128xf32>
    %c0_5 = arith.constant 0 : index
    %c0_6 = arith.constant 0 : index
    %10 = vector.load %arg10[%c0_5, %c0_6] : memref<8x128xf32, #tpu.memory_space<vmem>>, vector<8x128xf32>
    %cst_7 = arith.constant 1.000000e+00 : f32
    %11 = vector.broadcast %cst_7 : f32 to vector<8x128xf32>
    %12 = arith.cmpf ogt, %10, %11 : vector<8x128xf32>
    %13 = arith.extui %12 : vector<8x128xi1> to vector<8x128xi32>
    %14 = arith.sitofp %13 : vector<8x128xi32> to vector<8x128xf32>
    %cst_8 = arith.constant 1.000000e+00 : f32
    %15 = vector.broadcast %cst_8 : f32 to vector<8x128xf32>
    %16 = arith.subf %15, %14 : vector<8x128xf32>
    %cst_9 = arith.constant 0.949999988 : f32
    %17 = vector.broadcast %cst_9 : f32 to vector<8x128xf32>
    %18 = arith.mulf %17, %10 : vector<8x128xf32>
    %19 = arith.addf %18, %9 : vector<8x128xf32>
    %20 = arith.mulf %16, %19 : vector<8x128xf32>
    %c0_10 = arith.constant 0 : index
    %c0_11 = arith.constant 0 : index
    %21 = vector.load %arg10[%c0_10, %c0_11] : memref<8x128xf32, #tpu.memory_space<vmem>>, vector<8x128xf32>
    tpu.vector_store %arg10[%c0_10, %c0_11], %20 {strides = array<i32>} : memref<8x128xf32, #tpu.memory_space<vmem>>, vector<8x128xf32>,
    %cst_12 = arith.constant 1.000000e+00 : f32
    %22 = vector.broadcast %cst_12 : f32 to vector<8x128xf32>
    %23 = arith.cmpf ogt, %20, %22 : vector<8x128xf32>
    %24 = arith.extui %23 : vector<8x128xi1> to vector<8x128xi32>
    %25 = arith.sitofp %24 : vector<8x128xi32> to vector<8x128xf32>
    %c0_13 = arith.constant 0 : index
    %c0_14 = arith.constant 0 : index
    %26 = vector.load %arg9[%c0_13, %c0_14] : memref<128x128xf32, #tpu.memory_space<vmem>>, vector<128x128xf32>
    %cst_15 = arith.constant dense<0.000000e+00> : vector<8x128xf32>
    %27 = tpu.matmul %25, %26, %cst_15 {dimension_numbers = #tpu.dot_dimension_numbers<[1], [0], [0], [1], [0, 0, 1, 1], [], []>} : vector<8x128xf32>, vector<128x128xf32>, vector<8x128xf32> -> vector<8x128xf32>
    %c0_16 = arith.constant 0 : index
    %c0_17 = arith.constant 0 : index
    %28 = vector.load %arg11[%c0_16, %c0_17] : memref<8x128xf32, #tpu.memory_space<vmem>>, vector<8x128xf32>
    %cst_18 = arith.constant 1.000000e+00 : f32
    %29 = vector.broadcast %cst_18 : f32 to vector<8x128xf32>
    %30 = arith.cmpf ogt, %28, %29 : vector<8x128xf32>
    %31 = arith.extui %30 : vector<8x128xi1> to vector<8x128xi32>
    %32 = arith.sitofp %31 : vector<8x128xi32> to vector<8x128xf32>
    %cst_19 = arith.constant 1.000000e+00 : f32
    %33 = vector.broadcast %cst_19 : f32 to vector<8x128xf32>
    %34 = arith.subf %33, %32 : vector<8x128xf32>
    %cst_20 = arith.constant 0.949999988 : f32
    %35 = vector.broadcast %cst_20 : f32 to vector<8x128xf32>
    %36 = arith.mulf %35, %28 : vector<8x128xf32>
    %37 = arith.addf %36, %27 : vector<8x128xf32>
    %38 = arith.mulf %34, %37 : vector<8x128xf32>
    %c0_21 = arith.constant 0 : index
    %c0_22 = arith.constant 0 : index
    %39 = vector.load %arg11[%c0_21, %c0_22] : memref<8x128xf32, #tpu.memory_space<vmem>>, vector<8x128xf32>
    tpu.vector_store %arg11[%c0_21, %c0_22], %38 {strides = array<i32>} : memref<8x128xf32, #tpu.memory_space<vmem>>, vector<8x128xf32>,
    %cst_23 = arith.constant 1.000000e+00 : f32
    %40 = vector.broadcast %cst_23 : f32 to vector<8x128xf32>
    %41 = arith.cmpf ogt, %38, %40 : vector<8x128xf32>
    %42 = arith.extui %41 : vector<8x128xi1> to vector<8x128xi32>
    %43 = arith.sitofp %42 : vector<8x128xi32> to vector<8x128xf32>
    %c0_24 = arith.constant 0 : index
    %c0_25 = arith.constant 0 : index
    %c0_26 = arith.constant 0 : index
    %44 = vector.load %arg6[%c0_24, %c0_25, %c0_26] : memref<4x8x128xf32, #tpu.memory_space<vmem>>, vector<1x8x128xf32>
    %45 = vector.shape_cast %44 : vector<1x8x128xf32> to vector<8x128xf32>
    %46 = vector.shape_cast %43 : vector<8x128xf32> to vector<1x8x128xf32>
    tpu.vector_store %arg6[%c0_24, %c0_25, %c0_26], %46 {strides = array<i32>} : memref<4x8x128xf32, #tpu.memory_space<vmem>>, vector<1x8x128xf32>,
    %c0_27 = arith.constant 0 : index
    %c0_28 = arith.constant 0 : index
    %c0_29 = arith.constant 0 : index
    %47 = vector.load %arg7[%c0_27, %c0_28, %c0_29] : memref<4x8x128xf32, #tpu.memory_space<vmem>>, vector<1x8x128xf32>
    %48 = vector.shape_cast %47 : vector<1x8x128xf32> to vector<8x128xf32>
    %49 = vector.shape_cast %38 : vector<8x128xf32> to vector<1x8x128xf32>
    tpu.vector_store %arg7[%c0_27, %c0_28, %c0_29], %49 {strides = array<i32>} : memref<4x8x128xf32, #tpu.memory_space<vmem>>, vector<1x8x128xf32>,
    %50 = vector.extract_strided_slice %7 {offsets = [1, 0, 0], sizes = [1, 8, 128], strides = [1, 1, 1]} : vector<4x8x128xf32> to vector<1x8x128xf32>
    %51 = vector.shape_cast %50 : vector<1x8x128xf32> to vector<8x128xf32>
    %c0_30 = arith.constant 0 : index
    %c0_31 = arith.constant 0 : index
    %52 = vector.load %arg10[%c0_30, %c0_31] : memref<8x128xf32, #tpu.memory_space<vmem>>, vector<8x128xf32>
    %cst_32 = arith.constant 1.000000e+00 : f32
    %53 = vector.broadcast %cst_32 : f32 to vector<8x128xf32>
    %54 = arith.cmpf ogt, %52, %53 : vector<8x128xf32>
    %55 = arith.extui %54 : vector<8x128xi1> to vector<8x128xi32>
    %56 = arith.sitofp %55 : vector<8x128xi32> to vector<8x128xf32>
    %cst_33 = arith.constant 1.000000e+00 : f32
    %57 = vector.broadcast %cst_33 : f32 to vector<8x128xf32>
    %58 = arith.subf %57, %56 : vector<8x128xf32>
    %cst_34 = arith.constant 0.949999988 : f32
    %59 = vector.broadcast %cst_34 : f32 to vector<8x128xf32>
    %60 = arith.mulf %59, %52 : vector<8x128xf32>
    %61 = arith.addf %60, %51 : vector<8x128xf32>
    %62 = arith.mulf %58, %61 : vector<8x128xf32>
    %c0_35 = arith.constant 0 : index
    %c0_36 = arith.constant 0 : index
    %63 = vector.load %arg10[%c0_35, %c0_36] : memref<8x128xf32, #tpu.memory_space<vmem>>, vector<8x128xf32>
    tpu.vector_store %arg10[%c0_35, %c0_36], %62 {strides = array<i32>} : memref<8x128xf32, #tpu.memory_space<vmem>>, vector<8x128xf32>,
    %cst_37 = arith.constant 1.000000e+00 : f32
    %64 = vector.broadcast %cst_37 : f32 to vector<8x128xf32>
    %65 = arith.cmpf ogt, %62, %64 : vector<8x128xf32>
    %66 = arith.extui %65 : vector<8x128xi1> to vector<8x128xi32>
    %67 = arith.sitofp %66 : vector<8x128xi32> to vector<8x128xf32>
    %c0_38 = arith.constant 0 : index
    %c0_39 = arith.constant 0 : index
    %68 = vector.load %arg9[%c0_38, %c0_39] : memref<128x128xf32, #tpu.memory_space<vmem>>, vector<128x128xf32>
    %cst_40 = arith.constant dense<0.000000e+00> : vector<8x128xf32>
    %69 = tpu.matmul %67, %68, %cst_40 {dimension_numbers = #tpu.dot_dimension_numbers<[1], [0], [0], [1], [0, 0, 1, 1], [], []>} : vector<8x128xf32>, vector<128x128xf32>, vector<8x128xf32> -> vector<8x128xf32>
    %c0_41 = arith.constant 0 : index
    %c0_42 = arith.constant 0 : index
    %70 = vector.load %arg11[%c0_41, %c0_42] : memref<8x128xf32, #tpu.memory_space<vmem>>, vector<8x128xf32>
    %cst_43 = arith.constant 1.000000e+00 : f32
    %71 = vector.broadcast %cst_43 : f32 to vector<8x128xf32>
    %72 = arith.cmpf ogt, %70, %71 : vector<8x128xf32>
    %73 = arith.extui %72 : vector<8x128xi1> to vector<8x128xi32>
    %74 = arith.sitofp %73 : vector<8x128xi32> to vector<8x128xf32>
    %cst_44 = arith.constant 1.000000e+00 : f32
    %75 = vector.broadcast %cst_44 : f32 to vector<8x128xf32>
    %76 = arith.subf %75, %74 : vector<8x128xf32>
    %cst_45 = arith.constant 0.949999988 : f32
    %77 = vector.broadcast %cst_45 : f32 to vector<8x128xf32>
    %78 = arith.mulf %77, %70 : vector<8x128xf32>
    %79 = arith.addf %78, %69 : vector<8x128xf32>
    %80 = arith.mulf %76, %79 : vector<8x128xf32>
    %c0_46 = arith.constant 0 : index
    %c0_47 = arith.constant 0 : index
    %81 = vector.load %arg11[%c0_46, %c0_47] : memref<8x128xf32, #tpu.memory_space<vmem>>, vector<8x128xf32>
    tpu.vector_store %arg11[%c0_46, %c0_47], %80 {strides = array<i32>} : memref<8x128xf32, #tpu.memory_space<vmem>>, vector<8x128xf32>,
    %cst_48 = arith.constant 1.000000e+00 : f32
    %82 = vector.broadcast %cst_48 : f32 to vector<8x128xf32>
    %83 = arith.cmpf ogt, %80, %82 : vector<8x128xf32>
    %84 = arith.extui %83 : vector<8x128xi1> to vector<8x128xi32>
    %85 = arith.sitofp %84 : vector<8x128xi32> to vector<8x128xf32>
    %c1 = arith.constant 1 : index
    %c0_49 = arith.constant 0 : index
    %c0_50 = arith.constant 0 : index
    %86 = vector.load %arg6[%c1, %c0_49, %c0_50] : memref<4x8x128xf32, #tpu.memory_space<vmem>>, vector<1x8x128xf32>
    %87 = vector.shape_cast %86 : vector<1x8x128xf32> to vector<8x128xf32>
    %88 = vector.shape_cast %85 : vector<8x128xf32> to vector<1x8x128xf32>
    tpu.vector_store %arg6[%c1, %c0_49, %c0_50], %88 {strides = array<i32>} : memref<4x8x128xf32, #tpu.memory_space<vmem>>, vector<1x8x128xf32>,
    %c1_51 = arith.constant 1 : index
    %c0_52 = arith.constant 0 : index
    %c0_53 = arith.constant 0 : index
    %89 = vector.load %arg7[%c1_51, %c0_52, %c0_53] : memref<4x8x128xf32, #tpu.memory_space<vmem>>, vector<1x8x128xf32>
    %90 = vector.shape_cast %89 : vector<1x8x128xf32> to vector<8x128xf32>
    %91 = vector.shape_cast %80 : vector<8x128xf32> to vector<1x8x128xf32>
    tpu.vector_store %arg7[%c1_51, %c0_52, %c0_53], %91 {strides = array<i32>} : memref<4x8x128xf32, #tpu.memory_space<vmem>>, vector<1x8x128xf32>,
    %92 = vector.extract_strided_slice %7 {offsets = [2, 0, 0], sizes = [1, 8, 128], strides = [1, 1, 1]} : vector<4x8x128xf32> to vector<1x8x128xf32>
    %93 = vector.shape_cast %92 : vector<1x8x128xf32> to vector<8x128xf32>
    %c0_54 = arith.constant 0 : index
    %c0_55 = arith.constant 0 : index
    %94 = vector.load %arg10[%c0_54, %c0_55] : memref<8x128xf32, #tpu.memory_space<vmem>>, vector<8x128xf32>
    %cst_56 = arith.constant 1.000000e+00 : f32
    %95 = vector.broadcast %cst_56 : f32 to vector<8x128xf32>
    %96 = arith.cmpf ogt, %94, %95 : vector<8x128xf32>
    %97 = arith.extui %96 : vector<8x128xi1> to vector<8x128xi32>
    %98 = arith.sitofp %97 : vector<8x128xi32> to vector<8x128xf32>
    %cst_57 = arith.constant 1.000000e+00 : f32
    %99 = vector.broadcast %cst_57 : f32 to vector<8x128xf32>
    %100 = arith.subf %99, %98 : vector<8x128xf32>
    %cst_58 = arith.constant 0.949999988 : f32
    %101 = vector.broadcast %cst_58 : f32 to vector<8x128xf32>
    %102 = arith.mulf %101, %94 : vector<8x128xf32>
    %103 = arith.addf %102, %93 : vector<8x128xf32>
    %104 = arith.mulf %100, %103 : vector<8x128xf32>
    %c0_59 = arith.constant 0 : index
    %c0_60 = arith.constant 0 : index
    %105 = vector.load %arg10[%c0_59, %c0_60] : memref<8x128xf32, #tpu.memory_space<vmem>>, vector<8x128xf32>
    tpu.vector_store %arg10[%c0_59, %c0_60], %104 {strides = array<i32>} : memref<8x128xf32, #tpu.memory_space<vmem>>, vector<8x128xf32>,
    %cst_61 = arith.constant 1.000000e+00 : f32
    %106 = vector.broadcast %cst_61 : f32 to vector<8x128xf32>
    %107 = arith.cmpf ogt, %104, %106 : vector<8x128xf32>
    %108 = arith.extui %107 : vector<8x128xi1> to vector<8x128xi32>
    %109 = arith.sitofp %108 : vector<8x128xi32> to vector<8x128xf32>
    %c0_62 = arith.constant 0 : index
    %c0_63 = arith.constant 0 : index
    %110 = vector.load %arg9[%c0_62, %c0_63] : memref<128x128xf32, #tpu.memory_space<vmem>>, vector<128x128xf32>
    %cst_64 = arith.constant dense<0.000000e+00> : vector<8x128xf32>
    %111 = tpu.matmul %109, %110, %cst_64 {dimension_numbers = #tpu.dot_dimension_numbers<[1], [0], [0], [1], [0, 0, 1, 1], [], []>} : vector<8x128xf32>, vector<128x128xf32>, vector<8x128xf32> -> vector<8x128xf32>
    %c0_65 = arith.constant 0 : index
    %c0_66 = arith.constant 0 : index
    %112 = vector.load %arg11[%c0_65, %c0_66] : memref<8x128xf32, #tpu.memory_space<vmem>>, vector<8x128xf32>
    %cst_67 = arith.constant 1.000000e+00 : f32
    %113 = vector.broadcast %cst_67 : f32 to vector<8x128xf32>
    %114 = arith.cmpf ogt, %112, %113 : vector<8x128xf32>
    %115 = arith.extui %114 : vector<8x128xi1> to vector<8x128xi32>
    %116 = arith.sitofp %115 : vector<8x128xi32> to vector<8x128xf32>
    %cst_68 = arith.constant 1.000000e+00 : f32
    %117 = vector.broadcast %cst_68 : f32 to vector<8x128xf32>
    %118 = arith.subf %117, %116 : vector<8x128xf32>
    %cst_69 = arith.constant 0.949999988 : f32
    %119 = vector.broadcast %cst_69 : f32 to vector<8x128xf32>
    %120 = arith.mulf %119, %112 : vector<8x128xf32>
    %121 = arith.addf %120, %111 : vector<8x128xf32>
    %122 = arith.mulf %118, %121 : vector<8x128xf32>
    %c0_70 = arith.constant 0 : index
    %c0_71 = arith.constant 0 : index
    %123 = vector.load %arg11[%c0_70, %c0_71] : memref<8x128xf32, #tpu.memory_space<vmem>>, vector<8x128xf32>
    tpu.vector_store %arg11[%c0_70, %c0_71], %122 {strides = array<i32>} : memref<8x128xf32, #tpu.memory_space<vmem>>, vector<8x128xf32>,
    %cst_72 = arith.constant 1.000000e+00 : f32
    %124 = vector.broadcast %cst_72 : f32 to vector<8x128xf32>
    %125 = arith.cmpf ogt, %122, %124 : vector<8x128xf32>
    %126 = arith.extui %125 : vector<8x128xi1> to vector<8x128xi32>
    %127 = arith.sitofp %126 : vector<8x128xi32> to vector<8x128xf32>
    %c2 = arith.constant 2 : index
    %c0_73 = arith.constant 0 : index
    %c0_74 = arith.constant 0 : index
    %128 = vector.load %arg6[%c2, %c0_73, %c0_74] : memref<4x8x128xf32, #tpu.memory_space<vmem>>, vector<1x8x128xf32>
    %129 = vector.shape_cast %128 : vector<1x8x128xf32> to vector<8x128xf32>
    %130 = vector.shape_cast %127 : vector<8x128xf32> to vector<1x8x128xf32>
    tpu.vector_store %arg6[%c2, %c0_73, %c0_74], %130 {strides = array<i32>} : memref<4x8x128xf32, #tpu.memory_space<vmem>>, vector<1x8x128xf32>,
    %c2_75 = arith.constant 2 : index
    %c0_76 = arith.constant 0 : index
    %c0_77 = arith.constant 0 : index
    %131 = vector.load %arg7[%c2_75, %c0_76, %c0_77] : memref<4x8x128xf32, #tpu.memory_space<vmem>>, vector<1x8x128xf32>
    %132 = vector.shape_cast %131 : vector<1x8x128xf32> to vector<8x128xf32>
    %133 = vector.shape_cast %122 : vector<8x128xf32> to vector<1x8x128xf32>
    tpu.vector_store %arg7[%c2_75, %c0_76, %c0_77], %133 {strides = array<i32>} : memref<4x8x128xf32, #tpu.memory_space<vmem>>, vector<1x8x128xf32>,
    %134 = vector.extract_strided_slice %7 {offsets = [3, 0, 0], sizes = [1, 8, 128], strides = [1, 1, 1]} : vector<4x8x128xf32> to vector<1x8x128xf32>
    %135 = vector.shape_cast %134 : vector<1x8x128xf32> to vector<8x128xf32>
    %c0_78 = arith.constant 0 : index
    %c0_79 = arith.constant 0 : index
    %136 = vector.load %arg10[%c0_78, %c0_79] : memref<8x128xf32, #tpu.memory_space<vmem>>, vector<8x128xf32>
    %cst_80 = arith.constant 1.000000e+00 : f32
    %137 = vector.broadcast %cst_80 : f32 to vector<8x128xf32>
    %138 = arith.cmpf ogt, %136, %137 : vector<8x128xf32>
    %139 = arith.extui %138 : vector<8x128xi1> to vector<8x128xi32>
    %140 = arith.sitofp %139 : vector<8x128xi32> to vector<8x128xf32>
    %cst_81 = arith.constant 1.000000e+00 : f32
    %141 = vector.broadcast %cst_81 : f32 to vector<8x128xf32>
    %142 = arith.subf %141, %140 : vector<8x128xf32>
    %cst_82 = arith.constant 0.949999988 : f32
    %143 = vector.broadcast %cst_82 : f32 to vector<8x128xf32>
    %144 = arith.mulf %143, %136 : vector<8x128xf32>
    %145 = arith.addf %144, %135 : vector<8x128xf32>
    %146 = arith.mulf %142, %145 : vector<8x128xf32>
    %c0_83 = arith.constant 0 : index
    %c0_84 = arith.constant 0 : index
    %147 = vector.load %arg10[%c0_83, %c0_84] : memref<8x128xf32, #tpu.memory_space<vmem>>, vector<8x128xf32>
    tpu.vector_store %arg10[%c0_83, %c0_84], %146 {strides = array<i32>} : memref<8x128xf32, #tpu.memory_space<vmem>>, vector<8x128xf32>,
    %cst_85 = arith.constant 1.000000e+00 : f32
    %148 = vector.broadcast %cst_85 : f32 to vector<8x128xf32>
    %149 = arith.cmpf ogt, %146, %148 : vector<8x128xf32>
    %150 = arith.extui %149 : vector<8x128xi1> to vector<8x128xi32>
    %151 = arith.sitofp %150 : vector<8x128xi32> to vector<8x128xf32>
    %c0_86 = arith.constant 0 : index
    %c0_87 = arith.constant 0 : index
    %152 = vector.load %arg9[%c0_86, %c0_87] : memref<128x128xf32, #tpu.memory_space<vmem>>, vector<128x128xf32>
    %cst_88 = arith.constant dense<0.000000e+00> : vector<8x128xf32>
    %153 = tpu.matmul %151, %152, %cst_88 {dimension_numbers = #tpu.dot_dimension_numbers<[1], [0], [0], [1], [0, 0, 1, 1], [], []>} : vector<8x128xf32>, vector<128x128xf32>, vector<8x128xf32> -> vector<8x128xf32>
    %c0_89 = arith.constant 0 : index
    %c0_90 = arith.constant 0 : index
    %154 = vector.load %arg11[%c0_89, %c0_90] : memref<8x128xf32, #tpu.memory_space<vmem>>, vector<8x128xf32>
    %cst_91 = arith.constant 1.000000e+00 : f32
    %155 = vector.broadcast %cst_91 : f32 to vector<8x128xf32>
    %156 = arith.cmpf ogt, %154, %155 : vector<8x128xf32>
    %157 = arith.extui %156 : vector<8x128xi1> to vector<8x128xi32>
    %158 = arith.sitofp %157 : vector<8x128xi32> to vector<8x128xf32>
    %cst_92 = arith.constant 1.000000e+00 : f32
    %159 = vector.broadcast %cst_92 : f32 to vector<8x128xf32>
    %160 = arith.subf %159, %158 : vector<8x128xf32>
    %cst_93 = arith.constant 0.949999988 : f32
    %161 = vector.broadcast %cst_93 : f32 to vector<8x128xf32>
    %162 = arith.mulf %161, %154 : vector<8x128xf32>
    %163 = arith.addf %162, %153 : vector<8x128xf32>
    %164 = arith.mulf %160, %163 : vector<8x128xf32>
    %c0_94 = arith.constant 0 : index
    %c0_95 = arith.constant 0 : index
    %165 = vector.load %arg11[%c0_94, %c0_95] : memref<8x128xf32, #tpu.memory_space<vmem>>, vector<8x128xf32>
    tpu.vector_store %arg11[%c0_94, %c0_95], %164 {strides = array<i32>} : memref<8x128xf32, #tpu.memory_space<vmem>>, vector<8x128xf32>,
    %cst_96 = arith.constant 1.000000e+00 : f32
    %166 = vector.broadcast %cst_96 : f32 to vector<8x128xf32>
    %167 = arith.cmpf ogt, %164, %166 : vector<8x128xf32>
    %168 = arith.extui %167 : vector<8x128xi1> to vector<8x128xi32>
    %169 = arith.sitofp %168 : vector<8x128xi32> to vector<8x128xf32>
    %c3 = arith.constant 3 : index
    %c0_97 = arith.constant 0 : index
    %c0_98 = arith.constant 0 : index
    %170 = vector.load %arg6[%c3, %c0_97, %c0_98] : memref<4x8x128xf32, #tpu.memory_space<vmem>>, vector<1x8x128xf32>
    %171 = vector.shape_cast %170 : vector<1x8x128xf32> to vector<8x128xf32>
    %172 = vector.shape_cast %169 : vector<8x128xf32> to vector<1x8x128xf32>
    tpu.vector_store %arg6[%c3, %c0_97, %c0_98], %172 {strides = array<i32>} : memref<4x8x128xf32, #tpu.memory_space<vmem>>, vector<1x8x128xf32>,
    %c3_99 = arith.constant 3 : index
    %c0_100 = arith.constant 0 : index
    %c0_101 = arith.constant 0 : index
    %173 = vector.load %arg7[%c3_99, %c0_100, %c0_101] : memref<4x8x128xf32, #tpu.memory_space<vmem>>, vector<1x8x128xf32>
    %174 = vector.shape_cast %173 : vector<1x8x128xf32> to vector<8x128xf32>
    %175 = vector.shape_cast %164 : vector<8x128xf32> to vector<1x8x128xf32>
    tpu.vector_store %arg7[%c3_99, %c0_100, %c0_101], %175 {strides = array<i32>} : memref<4x8x128xf32, #tpu.memory_space<vmem>>, vector<1x8x128xf32>,
    return
  }
  func.func @transform_0(%arg0: i32) -> (i32, i32, i32) {
    %c0_i32 = arith.constant 0 : i32
    %c0_i32_0 = arith.constant 0 : i32
    %c0_i32_1 = arith.constant 0 : i32
    return %arg0, %c0_i32, %c0_i32_0 : i32, i32, i32
  }
  func.func @transform_1(%arg0: i32) -> (i32, i32) {
    %c0_i32 = arith.constant 0 : i32
    %c0_i32_0 = arith.constant 0 : i32
    %c0_i32_1 = arith.constant 0 : i32
    return %c0_i32, %c0_i32_0 : i32, i32
  }
  func.func @transform_2(%arg0: i32) -> (i32, i32) {
    %c0_i32 = arith.constant 0 : i32
    %c0_i32_0 = arith.constant 0 : i32
    %c0_i32_1 = arith.constant 0 : i32
    return %c0_i32, %c0_i32_0 : i32, i32
  }
  func.func @transform_3(%arg0: i32) -> (i32, i32) {
    %c0_i32 = arith.constant 0 : i32
    %c0_i32_0 = arith.constant 0 : i32
    %c0_i32_1 = arith.constant 0 : i32
    return %c0_i32, %c0_i32_0 : i32, i32
  }
  func.func @transform_4(%arg0: i32) -> (i32, i32) {
    %c0_i32 = arith.constant 0 : i32
    %c0_i32_0 = arith.constant 0 : i32
    %c0_i32_1 = arith.constant 0 : i32
    return %c0_i32, %c0_i32_0 : i32, i32
  }
  func.func @transform_5(%arg0: i32) -> (i32, i32, i32) {
    %c0_i32 = arith.constant 0 : i32
    %c0_i32_0 = arith.constant 0 : i32
    %c0_i32_1 = arith.constant 0 : i32
    return %arg0, %c0_i32, %c0_i32_0 : i32, i32, i32
  }
  func.func @transform_6(%arg0: i32) -> (i32, i32, i32) {
    %c0_i32 = arith.constant 0 : i32
    %c0_i32_0 = arith.constant 0 : i32
    %c0_i32_1 = arith.constant 0 : i32
    return %arg0, %c0_i32, %c0_i32_0 : i32, i32, i32
  }
}

</mosaic_0001>

<bundles_post_ra>
// kernel: tpu_custom_call.1
= control target key start
LH: loop header
LB: loop body
LE: loop exit
PB: predicated region body
PF: predicated region fallthrough
CT: control target
= control target key end

     0   :  { %12 = vsyncpa [#allocation7], 0  ;;  %s3562_s0 = inlined_call_operand.vmem [shape: f32[8,8,128], index: 0, kind: input, shape index: {}]   ;;  %s3563_s1 = inlined_call_operand.vmem [shape: f32[128,4], index: 1, kind: input, shape index: {}]   ;;  %s3564_s2 = inlined_call_operand.vmem [shape: f32[128,4], index: 2, kind: input, shape index: {}]   ;;  %s3565_s3 = inlined_call_operand.vmem [shape: f32[128,4], index: 3, kind: input, shape index: {}]   ;;  %s3566_s4 = inlined_call_operand.vmem [shape: f32[4,4], index: 4, kind: input, shape index: {}]   ;;  %s3567_s5 = inlined_call_operand.hbm [shape: f32[8,8,128], index: 5, kind: output, shape index: {0}]   ;;  %s3568_s6 = inlined_call_operand.hbm [shape: f32[8,8,128], index: 6, kind: output, shape index: {1}]  }
   0x1   :  { %14 = vsyncpa [#allocation7 + $0x1], 0 }
   0x2   :  { %15 = vsyncpa [#allocation9], 0 }
   0x3   :  { %17 = vsyncpa [#allocation9 + $0x1], 0  ;;  %s3015_s21 = smov 0   ;;  %s3017_s22 = smov 0  }
   0x4   :  { %s3019_s23 = smov 0   ;;  %s3021_s24 = smov 0  }
   0x5 LB: > { %s3036_s25 = sadd.s32 4294967295, %s2969_s24   ;;  %s1929_s26 = sadd.s32 4294967294, %s2969_s24   ;;  %s2969_s24 = sphi %s3021_s24, %s3576_s24   ;;  %s2965_s23 = sphi %s3019_s23, %s3575_s23   ;;  %s2961_s22 = sphi %s3017_s22, %s3574_s22   ;;  %s2957_s21 = sphi %s3015_s21, %s3573_s21  }
   0x6   : > { %s3040_s27 = sadd.s32 1, %s2969_s24   ;;  %s140_s28 = sadd.s32 1, %s2965_s23 }
   0x7   : > { %s137_s29 = ssub.s32 %s2969_s24, %s3040_s27  ;;  %p150_p0 = scmp.ne.s32.totalorder %s2965_s23, %s2961_s22 }
   0x8   : > { %p138_p1 = scmp.eq.s32.totalorder %s137_s29, 0  ;;  %p151_p2 = scmp.eq.s32.totalorder %s3036_s25, 1 }
   0x9   : > { %p156_p3 = scmp.ne.s32.totalorder %s2961_s22, %s2957_s21  ;;  %p157_p4 = scmp.eq.s32.totalorder %s1929_s26, 1 }
   0xa   : > { %s3051_s30 = scalar_select %p138_p1, %s2965_s23, %s140_s28  }
   0xb   : > { %p3053_p5 = por %p151_p2, %p150_p0  ;;  %p3057_p6 = por %p157_p4, %p156_p3 }
   0xc   : > { %p1932_p7 = scmp.ge.s32.totalorder %s2969_s24, 1  ;;  %p222_p8 = scmp.lt.s32.totalorder %s2969_s24, 3 }
   0xe   : > { %p223_p9 = pnand %p1932_p7, %p222_p8 }
   0xf   : > { %s3064_s9 = sand.u32 (!%p223_p9), 1, %s2961_s22   ;;  %s1935_s10 = sshll.u32 (!%p223_p9), %s3036_s25, 2 }
  0x10   : > { %226 = sbr.rel (%p223_p9) target bundleno = 1030 (0x406), region = 40  ;;  %s1933_s11 = sshll.u32 (!%p223_p9), %s3064_s9, 5 }
  0x11   : > { %p258_p10 = scmp.lt.s32.totalorder (!%p223_p9), %s1935_s10, 7  ;;  %s3073_s16 = scalar_lea.vmem (!%p223_p9), [#allocation6], %s1933_s11 }
  0x12   : > { %s3075_s17 = scalar_lea.vmem (!%p223_p9), [#allocation8], %s1933_s11  ;;  %p1937_p11 = scmp.ne.s32.totalorder (!%p223_p9), %s3036_s25, 0 }
  0x17   : > { %s3578_s10 = smov (!%p258_p10, %s1935_s10), 7  ;;  %268 = sbr.rel (%p1937_p11) target bundleno = 484 (0x1e4), region = 44 }
  0x18   : > { %s1936_s12 = sshll.u32 %s3578_s10, 3  ;;  %v269_v0 = vld [vmem:[%s3566_s4] sm:$0xf] (!%p1937_p11)  ;;  %vm335_vm0 = vcmask (!%p1937_p11), 1043456   ;;  %vm286_vm1 = vcmask (!%p1937_p11), 31744   ;;  %v2971_v2 = vmov (!%p1937_p11), 0.0  }
  0x19   : > { %s3071_s15 = scalar_lea.vmem %s3562_s0, %s1936_s12  ;;  %v270_v1 = vld [vmem:[%s3563_s1] sm:$0xff] (!%p1937_p11)  ;;  %2258 = vmatprep.subr.msk.mxu1 (!%p1937_p11), %vm335_vm0, %v269_v0  ;;  %757 = vst [vmem:[#allocation4] sm:$0xff] (!%p1937_p11), %v2971_v2  ;;  %2340 = vmatprep.subr.msk.mxu0 (!%p1937_p11), %vm335_vm0, %v269_v0  ;;  %1240 = vst [vmem:[#allocation5] sm:$0xff] (!%p1937_p11), %v2971_v2  ;;  %v271_v4 = vld [vmem:[%s3563_s1 + $0x8] sm:$0xff] (!%p1937_p11) }
  0x1a   : > { %v758_v3 = vld [vmem:[%s3564_s2] sm:$0xff] (!%p1937_p11)  ;;  %v759_v5 = vld [vmem:[%s3564_s2 + $0x8] sm:$0xff] (!%p1937_p11)  ;;  %2259 = vmatpush3.msk.msra.mxu1 (!%p1937_p11), %vm335_vm0, %v269_v0  ;;  %2260 = vmatprep.mubr.msk.f32.mxu1 (!%p1937_p11), %vm286_vm1, %v270_v1  ;;  %v272_v6 = vld [vmem:[%s3563_s1 + $0x10] sm:$0xff] (!%p1937_p11) }
  0x1b   : > { %v760_v7 = vld [vmem:[%s3564_s2 + $0x10] sm:$0xff] (!%p1937_p11)  ;;  %2341 = vmatpush3.msk.msra.mxu0 (!%p1937_p11), %vm335_vm0, %v269_v0  ;;  %2342 = vmatprep.mubr.msk.f32.mxu0 (!%p1937_p11), %vm286_vm1, %v758_v3  ;;  %v273_v8 = vld [vmem:[%s3563_s1 + $0x18] sm:$0xff] (!%p1937_p11)  ;;  %v274_v10 = vld [vmem:[%s3563_s1 + $0x20] sm:$0xff] (!%p1937_p11)  ;;  %v2600_v16 = vpack.c.bf16 (!%p1937_p11), %v759_v5, %v758_v3 }
  0x1c   : > { %2261 = vmatmul.mubr.msk.f32.vlgmr.msra.gmra.mrb[0].mxu1 (!%p1937_p11), %vm286_vm1, %v271_v4  ;;  %2343 = vmatmul.mubr.msk.f32.vlgmr.msra.gmra.mrb[0].mxu0 (!%p1937_p11), %vm286_vm1, %v759_v5  ;;  %v761_v9 = vld [vmem:[%s3564_s2 + $0x18] sm:$0xff] (!%p1937_p11)  ;;  %v762_v11 = vld [vmem:[%s3564_s2 + $0x20] sm:$0xff] (!%p1937_p11)  ;;  %v275_v12 = vld [vmem:[%s3563_s1 + $0x28] sm:$0xff] (!%p1937_p11) }
  0x1d   : > { %2263 = vmatprep.mubr.msk.f32.mxu1 (!%p1937_p11), %vm286_vm1, %v272_v6  ;;  %2345 = vmatprep.mubr.msk.f32.mxu0 (!%p1937_p11), %vm286_vm1, %v760_v7  ;;  %v763_v13 = vld [vmem:[%s3564_s2 + $0x28] sm:$0xff] (!%p1937_p11)  ;;  %v276_v14 = vld [vmem:[%s3563_s1 + $0x30] sm:$0xff] (!%p1937_p11)  ;;  %vm3137_vm2 = vmpackc.low (!%p1937_p11), %vm286_vm1, %vm286_vm1  ;;  %v2606_v27 = vpack.c.bf16 (!%p1937_p11), %v761_v9, %v760_v7 }
  0x1e   : > { %v3133_v15 = vld [vmem:[%s3564_s2 + $0x30] sm:$0xff]  ;;  %v967_v18 = vld [vmem:[%s3565_s3] sm:$0xff]  ;;  %v968_v19 = vld [vmem:[%s3565_s3 + $0x8] sm:$0xff]  ;;  %2602 = vmatprep.subr.msk.bf16.mxu1 %vm3137_vm2, %v2600_v16  ;;  %v2612_v39 = vpack.c.bf16 %v763_v13, %v762_v11 }
  0x1f   : > { %v969_v20 = vld [vmem:[%s3565_s3 + $0x10] sm:$0xff]  ;;  %v970_v21 = vld [vmem:[%s3565_s3 + $0x18] sm:$0xff]  ;;  %v2648_v24 = vpack.c.bf16 %v968_v19, %v967_v18  ;;  %v278_v25 = vld [vmem:[%s3563_s1 + $0x40] sm:$0xff] }
  0x20   : > { %2264 = vmatmul.mubr.msk.f32.gmra.mrb[2].mxu1 %vm286_vm1, %v273_v8  ;;  %2346 = vmatmul.mubr.msk.f32.gmra.mrb[2].mxu0 %vm286_vm1, %v761_v9  ;;  %v277_v22 = vld [vmem:[%s3563_s1 + $0x38] sm:$0xff]  ;;  %v766_v26 = vld [vmem:[%s3564_s2 + $0x40] sm:$0xff]  ;;  %v2654_v28 = vpack.c.bf16 %v970_v21, %v969_v20  ;;  %v279_v29 = vld [vmem:[%s3563_s1 + $0x48] sm:$0xff] }
  0x21   : > { %2266 = vmatprep.mubr.msk.f32.mxu1 %vm286_vm1, %v274_v10  ;;  %2348 = vmatprep.mubr.msk.f32.mxu0 %vm286_vm1, %v762_v11  ;;  %v765_v23 = vld [vmem:[%s3564_s2 + $0x38] sm:$0xff]  ;;  %v767_v30 = vld [vmem:[%s3564_s2 + $0x48] sm:$0xff]  ;;  %v280_v31 = vld [vmem:[%s3563_s1 + $0x50] sm:$0xff] }
  0x22   : > { %2650 = vmatprep.subr.msk.bf16.mxu0 %vm3137_vm2, %v2648_v24  ;;  %2605 = vmatpush3.bf16.xpose.msk.msra.mxu1 %vm3137_vm2, %v2600_v16  ;;  %v768_v32 = vld [vmem:[%s3564_s2 + $0x50] sm:$0xff]  ;;  %v971_v33 = vld [vmem:[%s3565_s3 + $0x20] sm:$0xff]  ;;  %v972_v34 = vld [vmem:[%s3565_s3 + $0x28] sm:$0xff]  ;;  %v2618_v49 = vpack.c.bf16 %v765_v23, %v3133_v15  ;;  %v2624_v51 = vpack.c.bf16 %v767_v30, %v766_v26 }
  0x23   : > { %2653 = vmatpush3.bf16.xpose.msk.msra.mxu0 %vm3137_vm2, %v2648_v24  ;;  %2608 = vmatprep.subr.msk.bf16.mxu1 %vm3137_vm2, %v2606_v27  ;;  %v281_v35 = vld [vmem:[%s3563_s1 + $0x58] sm:$0xff]  ;;  %v282_v37 = vld [vmem:[%s3563_s1 + $0x60] sm:$0xff]  ;;  %v2660_v40 = vpack.c.bf16 %v972_v34, %v971_v33  ;;  %v283_v41 = vld [vmem:[%s3563_s1 + $0x68] sm:$0xff] }
  0x24   : > { %2267 = vmatmul.mubr.msk.f32.gmra.mrb[4].mxu1 %vm286_vm1, %v275_v12  ;;  %2349 = vmatmul.mubr.msk.f32.gmra.mrb[4].mxu0 %vm286_vm1, %v763_v13  ;;  %v769_v36 = vld [vmem:[%s3564_s2 + $0x58] sm:$0xff]  ;;  %v770_v38 = vld [vmem:[%s3564_s2 + $0x60] sm:$0xff]  ;;  %v771_v42 = vld [vmem:[%s3564_s2 + $0x68] sm:$0xff] }
  0x25   : > { %2269 = vmatprep.mubr.msk.f32.mxu1 %vm286_vm1, %v276_v14  ;;  %2351 = vmatprep.mubr.msk.f32.mxu0 %vm286_vm1, %v3133_v15  ;;  %v284_v43 = vld [vmem:[%s3563_s1 + $0x70] sm:$0xff]  ;;  %v974_v46 = vld [vmem:[%s3565_s3 + $0x38] sm:$0xff]  ;;  %v975_v52 = vld [vmem:[%s3565_s3 + $0x40] sm:$0xff]  ;;  %v2630_v55 = vpack.c.bf16 %v769_v36, %v768_v32  ;;  %v2636_v59 = vpack.c.bf16 %v771_v42, %v770_v38 }
  0x26   : > { %2656 = vmatprep.subr.msk.bf16.mxu0 %vm3137_vm2, %v2654_v28  ;;  %v772_v44 = vld [vmem:[%s3564_s2 + $0x70] sm:$0xff]  ;;  %v285_v47 = vld [vmem:[%s3563_s1 + $0x78] sm:$0xff]  ;;  %v976_v53 = vld [vmem:[%s3565_s3 + $0x48] sm:$0xff] }
  0x27   : > { %v973_v45 = vld [vmem:[%s3565_s3 + $0x30] sm:$0xff]  ;;  %v773_v48 = vld [vmem:[%s3564_s2 + $0x78] sm:$0xff]  ;;  %v2672_v54 = vpack.c.bf16 %v976_v53, %v975_v52  ;;  %v979_v60 = vld [vmem:[%s3565_s3 + $0x60] sm:$0xff] }
  0x28   : > { %2270 = vmatmul.mubr.msk.f32.gmra.mrb[6].mxu1 %vm286_vm1, %v277_v22  ;;  %2352 = vmatmul.mubr.msk.f32.gmra.mrb[6].mxu0 %vm286_vm1, %v765_v23  ;;  %v2666_v50 = vpack.c.bf16 %v974_v46, %v973_v45  ;;  %v977_v56 = vld [vmem:[%s3565_s3 + $0x50] sm:$0xff]  ;;  %v978_v57 = vld [vmem:[%s3565_s3 + $0x58] sm:$0xff]  ;;  %v980_v61 = vld [vmem:[%s3565_s3 + $0x68] sm:$0xff]  ;;  %v2642_v63 = vpack.c.bf16 %v773_v48, %v772_v44 }
  0x29   : > { %2272 = vmatprep.mubr.msk.f32.mxu1 %vm286_vm1, %v278_v25  ;;  %2354 = vmatprep.mubr.msk.f32.mxu0 %vm286_vm1, %v766_v26  ;;  %v2678_v58 = vpack.c.bf16 %v978_v57, %v977_v56  ;;  %v2684_v62 = vpack.c.bf16 %v980_v61, %v979_v60  ;;  %v981_v0 = vld [vmem:[%s3565_s3 + $0x70] sm:$0xff]  ;;  %v982_v1 = vld [vmem:[%s3565_s3 + $0x78] sm:$0xff] }
  0x2a   : > { %2611 = vmatpush3.bf16.xpose.msk.msra.mxu1 %vm3137_vm2, %v2606_v27  ;;  %v2690_v2 = vpack.c.bf16 %v982_v1, %v981_v0 }
  0x2b   : > { %2659 = vmatpush3.bf16.xpose.msk.msra.mxu0 %vm3137_vm2, %v2654_v28  ;;  %2614 = vmatprep.subr.msk.bf16.mxu1 %vm3137_vm2, %v2612_v39 }
  0x2c   : > { %2273 = vmatmul.mubr.msk.f32.gmra.mrb[8].mxu1 %vm286_vm1, %v279_v29  ;;  %2355 = vmatmul.mubr.msk.f32.gmra.mrb[8].mxu0 %vm286_vm1, %v767_v30 }
  0x2d   : > { %2275 = vmatprep.mubr.msk.f32.mxu1 %vm286_vm1, %v280_v31  ;;  %2357 = vmatprep.mubr.msk.f32.mxu0 %vm286_vm1, %v768_v32 }
  0x2e   : > { %2662 = vmatprep.subr.msk.bf16.mxu0 %vm3137_vm2, %v2660_v40 }
  0x30   : > { %2276 = vmatmul.mubr.msk.f32.gmra.mrb[10].mxu1 %vm286_vm1, %v281_v35  ;;  %2358 = vmatmul.mubr.msk.f32.gmra.mrb[10].mxu0 %vm286_vm1, %v769_v36 }
  0x31   : > { %2278 = vmatprep.mubr.msk.f32.mxu1 %vm286_vm1, %v282_v37  ;;  %2360 = vmatprep.mubr.msk.f32.mxu0 %vm286_vm1, %v770_v38 }
  0x32   : > { %2617 = vmatpush3.bf16.xpose.msk.msra.mxu1 %vm3137_vm2, %v2612_v39 }
  0x33   : > { %2620 = vmatprep.subr.msk.bf16.mxu1 %vm3137_vm2, %v2618_v49  ;;  %2665 = vmatpush3.bf16.xpose.msk.msra.mxu0 %vm3137_vm2, %v2660_v40 }
  0x34   : > { %2279 = vmatmul.mubr.msk.f32.gmra.mrb[12].mxu1 %vm286_vm1, %v283_v41  ;;  %2361 = vmatmul.mubr.msk.f32.gmra.mrb[12].mxu0 %vm286_vm1, %v771_v42 }
  0x35   : > { %2281 = vmatprep.mubr.msk.f32.mxu1 %vm286_vm1, %v284_v43  ;;  %2363 = vmatprep.mubr.msk.f32.mxu0 %vm286_vm1, %v772_v44 }
  0x36   : > { %2668 = vmatprep.subr.msk.bf16.mxu0 %vm3137_vm2, %v2666_v50 }
  0x38   : > { %2282 = vmatmul.mubr.msk.f32.gmra.mrb[14].mxu1 %vm286_vm1, %v285_v47  ;;  %2364 = vmatmul.mubr.msk.f32.gmra.mrb[14].mxu0 %vm286_vm1, %v773_v48 }
  0x3a   : > { %2623 = vmatpush3.bf16.xpose.msk.msra.mxu1 %vm3137_vm2, %v2618_v49 }
  0x3b   : > { %2626 = vmatprep.subr.msk.bf16.mxu1 %vm3137_vm2, %v2624_v51  ;;  %2671 = vmatpush3.bf16.xpose.msk.msra.mxu0 %vm3137_vm2, %v2666_v50 }
  0x3c   : > { %2674 = vmatprep.subr.msk.bf16.mxu0 %vm3137_vm2, %v2672_v54 }
  0x42   : > { %2629 = vmatpush3.bf16.xpose.msk.msra.mxu1 %vm3137_vm2, %v2624_v51 }
  0x43   : > { %2632 = vmatprep.subr.msk.bf16.mxu1 %vm3137_vm2, %v2630_v55  ;;  %2677 = vmatpush3.bf16.xpose.msk.msra.mxu0 %vm3137_vm2, %v2672_v54 }
  0x44   : > { %2680 = vmatprep.subr.msk.bf16.mxu0 %vm3137_vm2, %v2678_v58 }
  0x4a   : > { %2635 = vmatpush3.bf16.xpose.msk.msra.mxu1 %vm3137_vm2, %v2630_v55 }
  0x4b   : > { %2638 = vmatprep.subr.msk.bf16.mxu1 %vm3137_vm2, %v2636_v59  ;;  %2683 = vmatpush3.bf16.xpose.msk.msra.mxu0 %vm3137_vm2, %v2678_v58 }
  0x4c   : > { %2686 = vmatprep.subr.msk.bf16.mxu0 %vm3137_vm2, %v2684_v62 }
  0x52   : > { %2641 = vmatpush3.bf16.xpose.msk.msra.mxu1 %vm3137_vm2, %v2636_v59 }
  0x53   : > { %2644 = vmatprep.subr.msk.bf16.mxu1 %vm3137_vm2, %v2642_v63  ;;  %2689 = vmatpush3.bf16.xpose.msk.msra.mxu0 %vm3137_vm2, %v2684_v62 }
  0x54   : > { %2692 = vmatprep.subr.msk.bf16.mxu0 %vm3137_vm2, %v2690_v2 }
  0x5a   : > { %2647 = vmatpush3.bf16.xpose.msk.msra.mxu1 %vm3137_vm2, %v2642_v63 }
  0x5b   : > { %2695 = vmatpush3.bf16.xpose.msk.msra.mxu0 %vm3137_vm2, %v2690_v2 }
  0xef   : > { %v2262_v3 = vpop.f32.mrb[0].mxu1  ;;  %v2344_v4 = vpop.f32.mrb[0].mxu0 }
  0xf0   : > { %v405_v5 = vpop.f32.mrb[1].mxu1  ;;  %v888_v6 = vpop.f32.mrb[1].mxu0 }
  0xf1   : > { %2316 = vmatprep.mubr.msk.f32.mxu1 %vm286_vm1, %v405_v5  ;;  %2398 = vmatprep.mubr.msk.f32.mxu0 %vm286_vm1, %v888_v6 }
  0xf2   : > { %2317 = vmatmul.mubr.msk.f32.vlgmr.msra.gmra.mrb[16].mxu1 %vm286_vm1, %v2262_v3  ;;  %2399 = vmatmul.mubr.msk.f32.vlgmr.msra.gmra.mrb[16].mxu0 %vm286_vm1, %v2344_v4 }
  0xf3   : > { %v2265_v7 = vpop.f32.mrb[2].mxu1  ;;  %v2347_v8 = vpop.f32.mrb[2].mxu0 }
  0xf4   : > { %v415_v9 = vpop.f32.mrb[3].mxu1  ;;  %v898_v10 = vpop.f32.mrb[3].mxu0 }
  0xf5   : > { %2319 = vmatprep.mubr.msk.f32.mxu1 %vm286_vm1, %v415_v9  ;;  %2401 = vmatprep.mubr.msk.f32.mxu0 %vm286_vm1, %v898_v10 }
  0xf6   : > { %2320 = vmatmul.mubr.msk.f32.gmra.mrb[18].mxu1 %vm286_vm1, %v2265_v7  ;;  %2402 = vmatmul.mubr.msk.f32.gmra.mrb[18].mxu0 %vm286_vm1, %v2347_v8 }
  0xf7   : > { %v2268_v11 = vpop.f32.mrb[4].mxu1  ;;  %v2350_v12 = vpop.f32.mrb[4].mxu0 }
  0xf8   : > { %v425_v13 = vpop.f32.mrb[5].mxu1  ;;  %v908_v14 = vpop.f32.mrb[5].mxu0 }
  0xf9   : > { %2322 = vmatprep.mubr.msk.f32.mxu1 %vm286_vm1, %v425_v13  ;;  %2404 = vmatprep.mubr.msk.f32.mxu0 %vm286_vm1, %v908_v14 }
  0xfa   : > { %2323 = vmatmul.mubr.msk.f32.gmra.mrb[20].mxu1 %vm286_vm1, %v2268_v11  ;;  %2405 = vmatmul.mubr.msk.f32.gmra.mrb[20].mxu0 %vm286_vm1, %v2350_v12 }
  0xfb   : > { %v2271_v15 = vpop.f32.mrb[6].mxu1  ;;  %v2353_v16 = vpop.f32.mrb[6].mxu0 }
  0xfc   : > { %v435_v17 = vpop.f32.mrb[7].mxu1  ;;  %v918_v18 = vpop.f32.mrb[7].mxu0 }
  0xfd   : > { %2325 = vmatprep.mubr.msk.f32.mxu1 %vm286_vm1, %v435_v17  ;;  %2407 = vmatprep.mubr.msk.f32.mxu0 %vm286_vm1, %v918_v18 }
  0xfe   : > { %2326 = vmatmul.mubr.msk.f32.gmra.mrb[22].mxu1 %vm286_vm1, %v2271_v15  ;;  %2408 = vmatmul.mubr.msk.f32.gmra.mrb[22].mxu0 %vm286_vm1, %v2353_v16 }
  0xff   : > { %v2274_v19 = vpop.f32.mrb[8].mxu1  ;;  %v2356_v20 = vpop.f32.mrb[8].mxu0 }
 0x100   : > { %v445_v21 = vpop.f32.mrb[9].mxu1  ;;  %v928_v22 = vpop.f32.mrb[9].mxu0 }
 0x101   : > { %2328 = vmatprep.mubr.msk.f32.mxu1 %vm286_vm1, %v445_v21  ;;  %2410 = vmatprep.mubr.msk.f32.mxu0 %vm286_vm1, %v928_v22 }
 0x102   : > { %2329 = vmatmul.mubr.msk.f32.gmra.mrb[24].mxu1 %vm286_vm1, %v2274_v19  ;;  %2411 = vmatmul.mubr.msk.f32.gmra.mrb[24].mxu0 %vm286_vm1, %v2356_v20 }
 0x103   : > { %v2277_v23 = vpop.f32.mrb[10].mxu1  ;;  %v2359_v24 = vpop.f32.mrb[10].mxu0 }
 0x104   : > { %v455_v25 = vpop.f32.mrb[11].mxu1  ;;  %v938_v26 = vpop.f32.mrb[11].mxu0 }
 0x105   : > { %2331 = vmatprep.mubr.msk.f32.mxu1 %vm286_vm1, %v455_v25  ;;  %2413 = vmatprep.mubr.msk.f32.mxu0 %vm286_vm1, %v938_v26 }
 0x106   : > { %2332 = vmatmul.mubr.msk.f32.gmra.mrb[26].mxu1 %vm286_vm1, %v2277_v23  ;;  %2414 = vmatmul.mubr.msk.f32.gmra.mrb[26].mxu0 %vm286_vm1, %v2359_v24 }
 0x107   : > { %v2280_v27 = vpop.f32.mrb[12].mxu1  ;;  %v2362_v28 = vpop.f32.mrb[12].mxu0 }
 0x108   : > { %v465_v29 = vpop.f32.mrb[13].mxu1  ;;  %v948_v30 = vpop.f32.mrb[13].mxu0 }
 0x109   : > { %2334 = vmatprep.mubr.msk.f32.mxu1 %vm286_vm1, %v465_v29  ;;  %2416 = vmatprep.mubr.msk.f32.mxu0 %vm286_vm1, %v948_v30 }
 0x10a   : > { %2335 = vmatmul.mubr.msk.f32.gmra.mrb[28].mxu1 %vm286_vm1, %v2280_v27  ;;  %2417 = vmatmul.mubr.msk.f32.gmra.mrb[28].mxu0 %vm286_vm1, %v2362_v28 }
 0x10b   : > { %v2283_v31 = vpop.f32.mrb[14].mxu1  ;;  %v2365_v32 = vpop.f32.mrb[14].mxu0 }
 0x10c   : > { %v475_v33 = vpop.f32.mrb[15].mxu1  ;;  %v958_v34 = vpop.f32.mrb[15].mxu0 }
 0x10d   : > { %2337 = vmatprep.mubr.msk.f32.mxu1 %vm286_vm1, %v475_v33  ;;  %2419 = vmatprep.mubr.msk.f32.mxu0 %vm286_vm1, %v958_v34 }
 0x10e   : > { %2338 = vmatmul.mubr.msk.f32.gmra.mrb[30].mxu1 %vm286_vm1, %v2283_v31  ;;  %2420 = vmatmul.mubr.msk.f32.gmra.mrb[30].mxu0 %vm286_vm1, %v2365_v32 }
 0x1c5   : > { %v2318_v35 = vpop.f32.mrb[16].mxu1  ;;  %v2400_v36 = vpop.f32.mrb[16].mxu0 }
 0x1c6   : > { %742 = vst [vmem:[#allocation2 + $0x8] sm:$0xff] %v2318_v35  ;;  %1225 = vst [vmem:[#allocation3 + $0x8] sm:$0xff] %v2400_v36  ;;  %v662_v37 = vpop.f32.mrb[17].mxu1  ;;  %v1145_v38 = vpop.f32.mrb[17].mxu0 }
 0x1c7   : > { %741 = vst [vmem:[#allocation2] sm:$0xff] %v662_v37  ;;  %1224 = vst [vmem:[#allocation3] sm:$0xff] %v1145_v38 }
 0x1c9   : > { %v2321_v39 = vpop.f32.mrb[18].mxu1  ;;  %v2403_v40 = vpop.f32.mrb[18].mxu0 }
 0x1ca   : > { %744 = vst [vmem:[#allocation2 + $0x18] sm:$0xff] %v2321_v39  ;;  %1227 = vst [vmem:[#allocation3 + $0x18] sm:$0xff] %v2403_v40  ;;  %v672_v41 = vpop.f32.mrb[19].mxu1  ;;  %v1155_v42 = vpop.f32.mrb[19].mxu0 }
 0x1cb   : > { %743 = vst [vmem:[#allocation2 + $0x10] sm:$0xff] %v672_v41  ;;  %1226 = vst [vmem:[#allocation3 + $0x10] sm:$0xff] %v1155_v42 }
 0x1cd   : > { %v2324_v43 = vpop.f32.mrb[20].mxu1  ;;  %v2406_v44 = vpop.f32.mrb[20].mxu0 }
 0x1ce   : > { %746 = vst [vmem:[#allocation2 + $0x28] sm:$0xff] %v2324_v43  ;;  %1229 = vst [vmem:[#allocation3 + $0x28] sm:$0xff] %v2406_v44  ;;  %v682_v45 = vpop.f32.mrb[21].mxu1  ;;  %v1165_v46 = vpop.f32.mrb[21].mxu0 }
 0x1cf   : > { %745 = vst [vmem:[#allocation2 + $0x20] sm:$0xff] %v682_v45  ;;  %1228 = vst [vmem:[#allocation3 + $0x20] sm:$0xff] %v1165_v46 }
 0x1d1   : > { %v2327_v47 = vpop.f32.mrb[22].mxu1  ;;  %v2409_v48 = vpop.f32.mrb[22].mxu0 }
 0x1d2   : > { %748 = vst [vmem:[#allocation2 + $0x38] sm:$0xff] %v2327_v47  ;;  %1231 = vst [vmem:[#allocation3 + $0x38] sm:$0xff] %v2409_v48  ;;  %v692_v49 = vpop.f32.mrb[23].mxu1  ;;  %v1175_v50 = vpop.f32.mrb[23].mxu0 }
 0x1d3   : > { %747 = vst [vmem:[#allocation2 + $0x30] sm:$0xff] %v692_v49  ;;  %1230 = vst [vmem:[#allocation3 + $0x30] sm:$0xff] %v1175_v50 }
 0x1d5   : > { %v2330_v51 = vpop.f32.mrb[24].mxu1  ;;  %v2412_v52 = vpop.f32.mrb[24].mxu0 }
 0x1d6   : > { %750 = vst [vmem:[#allocation2 + $0x48] sm:$0xff] %v2330_v51  ;;  %1233 = vst [vmem:[#allocation3 + $0x48] sm:$0xff] %v2412_v52  ;;  %v702_v53 = vpop.f32.mrb[25].mxu1  ;;  %v1185_v54 = vpop.f32.mrb[25].mxu0 }
 0x1d7   : > { %749 = vst [vmem:[#allocation2 + $0x40] sm:$0xff] %v702_v53  ;;  %1232 = vst [vmem:[#allocation3 + $0x40] sm:$0xff] %v1185_v54 }
 0x1d9   : > { %v2333_v55 = vpop.f32.mrb[26].mxu1  ;;  %v2415_v56 = vpop.f32.mrb[26].mxu0 }
 0x1da   : > { %752 = vst [vmem:[#allocation2 + $0x58] sm:$0xff] %v2333_v55  ;;  %1235 = vst [vmem:[#allocation3 + $0x58] sm:$0xff] %v2415_v56  ;;  %v712_v57 = vpop.f32.mrb[27].mxu1  ;;  %v1195_v58 = vpop.f32.mrb[27].mxu0 }
 0x1db   : > { %751 = vst [vmem:[#allocation2 + $0x50] sm:$0xff] %v712_v57  ;;  %1234 = vst [vmem:[#allocation3 + $0x50] sm:$0xff] %v1195_v58 }
 0x1dd   : > { %v2336_v59 = vpop.f32.mrb[28].mxu1  ;;  %v2418_v60 = vpop.f32.mrb[28].mxu0 }
 0x1de   : > { %754 = vst [vmem:[#allocation2 + $0x68] sm:$0xff] %v2336_v59  ;;  %1237 = vst [vmem:[#allocation3 + $0x68] sm:$0xff] %v2418_v60  ;;  %v722_v61 = vpop.f32.mrb[29].mxu1  ;;  %v1205_v62 = vpop.f32.mrb[29].mxu0 }
 0x1df   : > { %753 = vst [vmem:[#allocation2 + $0x60] sm:$0xff] %v722_v61  ;;  %1236 = vst [vmem:[#allocation3 + $0x60] sm:$0xff] %v1205_v62 }
 0x1e1   : > { %v2339_v63 = vpop.f32.mrb[30].mxu1  ;;  %v2421_v0 = vpop.f32.mrb[30].mxu0 }
 0x1e2   : > { %756 = vst [vmem:[#allocation2 + $0x78] sm:$0xff] %v2339_v63  ;;  %1239 = vst [vmem:[#allocation3 + $0x78] sm:$0xff] %v2421_v0  ;;  %v732_v1 = vpop.f32.mrb[31].mxu1  ;;  %v1215_v2 = vpop.f32.mrb[31].mxu0 }
 0x1e3   : > { %755 = vst [vmem:[#allocation2 + $0x70] sm:$0xff] %v732_v1  ;;  %1238 = vst [vmem:[#allocation3 + $0x70] sm:$0xff] %v1215_v2 }
 0x1e4 PF: > { %v1245_v3 = vld [vmem:[#allocation2] sm:$0xff]  ;;  %v1246_v4 = vld [vmem:[#allocation2 + $0x8] sm:$0xff]  ;;  %v1247_v5 = vld [vmem:[#allocation2 + $0x10] sm:$0xff]  ;;  %v2972_v8 = vmov 0.0|0.0   ;;  %vm2973_vm3 = vmmov 0   ;;  %v2974_v56 = vmov 0.0  }
 0x1e5   : > { %v2696_v6 = vpack.c.bf16 %v1246_v4, %v1245_v3  ;;  %v1248_v7 = vld [vmem:[#allocation2 + $0x18] sm:$0xff]  ;;  %2728 = vmatprep.subr.bf16.mxu1 %v2972_v8  ;;  %v1249_v10 = vld [vmem:[#allocation2 + $0x20] sm:$0xff]  ;;  %v1250_v11 = vld [vmem:[#allocation2 + $0x28] sm:$0xff]  ;;  %2492 = vmatprep.mubr.msk.f32.mxu1 %vm2973_vm3, %v2974_v56  ;;  %s1835_s14 = sshll.u32 %s3075_s17, 4  ;;  %s1819_s18 = sshll.u32 %s3073_s16, 4  ;;  %s3479_s14 = int_to_ptr.vmem [resolvable:$true] %s1835_s14  ;;  %s3487_s18 = int_to_ptr.vmem [resolvable:$true] %s1819_s18 }
 0x1e6   : > { %v2700_v9 = vpack.c.bf16 %v1248_v7, %v1247_v5  ;;  %v2704_v12 = vpack.c.bf16 %v1250_v11, %v1249_v10  ;;  %v1241_v13 = vld [vmem:[%s3071_s15] sm:$0xff]  ;;  %v1251_v14 = vld [vmem:[#allocation2 + $0x30] sm:$0xff]  ;;  %v1252_v15 = vld [vmem:[#allocation2 + $0x38] sm:$0xff]  ;;  %v2975_v5 = vmov 1.0   ;;  %s1806_s10 = scalar_lea.sflag [#allocation9], %s3064_s9  ;;  %s2875_s11 = scalar_lea.vmem %s3479_s14, 512 }
 0x1e7   : > { %2697 = vmatprep.subr.bf16.mxu0 %v2696_v6  ;;  %2454 = vmatprep.mubr.f32.mxu0 %v1241_v13  ;;  %v1358_v16 = vld [vmem:[#allocation3] sm:$0xff]  ;;  %v1359_v17 = vld [vmem:[#allocation3 + $0x8] sm:$0xff]  ;;  %v1360_v18 = vld [vmem:[#allocation3 + $0x10] sm:$0xff]  ;;  %v2708_v21 = vpack.c.bf16 %v1252_v15, %v1251_v14  ;;  %p2876_p12 = scmp.ne.s32.totalorder %s3479_s14, %s2875_s11  ;;  %s2976_s12 = smov [#allocation8]  }
 0x1e8   : > { %2699 = vmatpush3.bf16.msra.mxu0 %v2696_v6  ;;  %v1361_v19 = vld [vmem:[#allocation3 + $0x18] sm:$0xff]  ;;  %v3365_v20 = vpack.c.bf16 %v1359_v17, %v1358_v16  ;;  %v1253_v22 = vld [vmem:[#allocation2 + $0x40] sm:$0xff]  ;;  %v1254_v23 = vld [vmem:[#allocation2 + $0x48] sm:$0xff]  ;;  %s2879_s13 = sshll.u32 %s2976_s12, 4  ;;  %s2880_s13 = int_to_ptr.vmem [resolvable:$false] %s2879_s13 }
 0x1e9   : > { %2701 = vmatprep.subr.bf16.mxu0 %v2700_v9  ;;  %v3368_v24 = vpack.c.bf16 %v1361_v19, %v1360_v18  ;;  %v1362_v25 = vld [vmem:[#allocation3 + $0x20] sm:$0xff]  ;;  %v1363_v26 = vld [vmem:[#allocation3 + $0x28] sm:$0xff]  ;;  %v2712_v27 = vpack.c.bf16 %v1254_v23, %v1253_v22  ;;  %v1255_v28 = vld [vmem:[#allocation2 + $0x50] sm:$0xff]  ;;  %p2877_p13 = pnand %p2876_p12, %p3053_p5  ;;  %s2881_s19 = scalar_lea.vmem %s2880_s13, 1024 }
 0x1ea   : > { %2730 = vmatpush3.bf16.msra.mxu1 %v3365_v20  ;;  %v1256_v29 = vld [vmem:[#allocation2 + $0x58] sm:$0xff]  ;;  %v3372_v30 = vpack.c.bf16 %v1363_v26, %v1362_v25  ;;  %v1364_v31 = vld [vmem:[#allocation3 + $0x30] sm:$0xff]  ;;  %v1257_v34 = vld [vmem:[#allocation2 + $0x60] sm:$0xff]  ;;  %p2882_p1 = scmp.lt.s32.totalorder %s3479_s14, %s2880_s13  ;;  %p2883_p2 = scmp.lt.s32.totalorder %s2881_s19, %s2875_s11 }
 0x1eb   : > { %2731 = vmatprep.subr.bf16.mxu1 %v2972_v8  ;;  %v1365_v32 = vld [vmem:[#allocation3 + $0x38] sm:$0xff]  ;;  %v2716_v33 = vpack.c.bf16 %v1256_v29, %v1255_v28  ;;  %v1258_v35 = vld [vmem:[#allocation2 + $0x68] sm:$0xff]  ;;  %v1366_v37 = vld [vmem:[#allocation3 + $0x40] sm:$0xff]  ;;  %p2878_p0 = pneg %p2877_p13 }
 0x1ec   : > { %2703 = vmatpush3.bf16.msra.mxu0 %v2700_v9  ;;  %v3376_v36 = vpack.c.bf16 %v1365_v32, %v1364_v31  ;;  %v1367_v38 = vld [vmem:[#allocation3 + $0x48] sm:$0xff]  ;;  %v2720_v39 = vpack.c.bf16 %v1258_v35, %v1257_v34  ;;  %v1259_v40 = vld [vmem:[#allocation2 + $0x70] sm:$0xff]  ;;  %v1260_v41 = vld [vmem:[#allocation2 + $0x78] sm:$0xff]  ;;  %p2884_p3 = por %p2883_p2, %p2882_p1 }
 0x1ed   : > { %2705 = vmatprep.subr.bf16.mxu0 %v2704_v12  ;;  %v3380_v42 = vpack.c.bf16 %v1367_v38, %v1366_v37  ;;  %v1368_v43 = vld [vmem:[#allocation3 + $0x50] sm:$0xff]  ;;  %v1369_v44 = vld [vmem:[#allocation3 + $0x58] sm:$0xff]  ;;  %v2724_v45 = vpack.c.bf16 %v1260_v41, %v1259_v40  ;;  %v1370_v47 = vld [vmem:[#allocation3 + $0x60] sm:$0xff] }
 0x1ee   : > { %2733 = vmatpush3.bf16.msra.mxu1 %v3368_v24  ;;  %v3384_v46 = vpack.c.bf16 %v1369_v44, %v1368_v43  ;;  %v1371_v48 = vld [vmem:[#allocation3 + $0x68] sm:$0xff]  ;;  %v1243_v51 = vld [vmem:[%s3071_s15 + $0x10] sm:$0xff]  ;;  %v1244_v52 = vld [vmem:[%s3071_s15 + $0x18] sm:$0xff]  ;;  %p2885_p4 = pnand %p2884_p3, %p2878_p0 }
 0x1ef   : > { %2734 = vmatprep.subr.bf16.mxu1 %v2972_v8  ;;  %v3388_v49 = vpack.c.bf16 %v1371_v48, %v1370_v47  ;;  %v1242_v50 = vld [vmem:[%s3071_s15 + $0x8] sm:$0xff]  ;;  %v1372_v53 = vld [vmem:[#allocation3 + $0x70] sm:$0xff]  ;;  %v1373_v54 = vld [vmem:[#allocation3 + $0x78] sm:$0xff]  ;;  %s2070_s15 = sshll.u32 %s3036_s25, 9 }
 0x1f0   : > { %2707 = vmatpush3.bf16.msra.mxu0 %v2704_v12  ;;  %v3411_v55 = vpack.c.bf16 %v1373_v54, %v1372_v53  ;;  %v1346_v57 = vld [vmem:[#allocation4] sm:$0xff]  ;;  %s3477_s26 = scalar_lea.hbm %s3568_s6, %s2070_s15  ;;  %s3485_s29 = scalar_lea.hbm %s3567_s5, %s2070_s15 }
 0x1f1   : > { %2709 = vmatprep.subr.bf16.mxu0 %v2708_v21  ;;  %vm1347_vm4 = vcmp.gt.f32.partialorder %v1346_v57, 1.0  ;;  %v1351_v59 = vmul.f32 0.95, %v1346_v57 }
 0x1f2   : > { %2736 = vmatpush3.bf16.msra.mxu1 %v3372_v30  ;;  %v2036_v58 = vsel %vm1347_vm4, 1.0, %v2974_v56 }
 0x1f3   : > { %2737 = vmatprep.subr.bf16.mxu1 %v2972_v8  ;;  %v1350_v61 = vsub.f32 1.0, %v2036_v58 }
 0x1f4   : > { %2711 = vmatpush3.bf16.msra.mxu0 %v2708_v21 }
 0x1f5   : > { %2713 = vmatprep.subr.bf16.mxu0 %v2712_v27 }
 0x1f6   : > { %2739 = vmatpush3.bf16.msra.mxu1 %v3376_v36 }
 0x1f7   : > { %2740 = vmatprep.subr.bf16.mxu1 %v2972_v8 }
 0x1f8   : > { %2715 = vmatpush3.bf16.msra.mxu0 %v2712_v27 }
 0x1f9   : > { %2717 = vmatprep.subr.bf16.mxu0 %v2716_v33 }
 0x1fa   : > { %2742 = vmatpush3.bf16.msra.mxu1 %v3380_v42 }
 0x1fb   : > { %2743 = vmatprep.subr.bf16.mxu1 %v2972_v8 }
 0x1fc   : > { %2719 = vmatpush3.bf16.msra.mxu0 %v2716_v33 }
 0x1fd   : > { %2721 = vmatprep.subr.bf16.mxu0 %v2720_v39 }
 0x1fe   : > { %2745 = vmatpush3.bf16.msra.mxu1 %v3384_v46 }
 0x1ff   : > { %2746 = vmatprep.subr.bf16.mxu1 %v2972_v8 }
 0x200   : > { %2723 = vmatpush3.bf16.msra.mxu0 %v2720_v39 }
 0x201   : > { %2725 = vmatprep.subr.bf16.mxu0 %v2724_v45 }
 0x202   : > { %2748 = vmatpush3.bf16.msra.mxu1 %v3388_v49 }
 0x203   : > { %2749 = vmatprep.subr.bf16.mxu1 %v2972_v8 }
 0x204   : > { %2727 = vmatpush3.bf16.msra.mxu0 %v2724_v45 }
 0x205   : > { %2752 = vmatprep.subr.bf16.mxu0 %v2972_v8 }
 0x206   : > { %2751 = vmatpush3.bf16.msra.mxu1 %v3411_v55 }
 0x207   : > { %2455 = vmatmul.mubr.f32.vlgmr.msra.gmra.mrb[0].mxu0 %v1242_v50  ;;  %2776 = vmatprep.subr.bf16.mxu1 %v2972_v8 }
 0x208   : > { %2457 = vmatprep.mubr.f32.mxu0 %v1243_v51  ;;  %2754 = vmatpush3.bf16.msra.mxu0 %v3365_v20 }
 0x209   : > { %2755 = vmatprep.subr.bf16.mxu0 %v2972_v8 }
 0x20b   : > { %2458 = vmatmul.mubr.f32.gmra.mrb[2].mxu0 %v1244_v52 }
 0x20c   : > { %2757 = vmatpush3.bf16.msra.mxu0 %v3368_v24  ;;  %2527 = vmatprep.mubr.msk.f32.mxu0 %vm2973_vm3, %v2974_v56 }
 0x20d   : > { %2758 = vmatprep.subr.bf16.mxu0 %v2972_v8 }
 0x210   : > { %2760 = vmatpush3.bf16.msra.mxu0 %v3372_v30 }
 0x211   : > { %2761 = vmatprep.subr.bf16.mxu0 %v2972_v8 }
 0x214   : > { %2763 = vmatpush3.bf16.msra.mxu0 %v3376_v36 }
 0x215   : > { %2764 = vmatprep.subr.bf16.mxu0 %v2972_v8 }
 0x218   : > { %2766 = vmatpush3.bf16.msra.mxu0 %v3380_v42 }
 0x219   : > { %2767 = vmatprep.subr.bf16.mxu0 %v2972_v8 }
 0x21c   : > { %2769 = vmatpush3.bf16.msra.mxu0 %v3384_v46 }
 0x21d   : > { %2770 = vmatprep.subr.bf16.mxu0 %v2972_v8 }
 0x220   : > { %2772 = vmatpush3.bf16.msra.mxu0 %v3388_v49 }
 0x221   : > { %2773 = vmatprep.subr.bf16.mxu0 %v2972_v8 }
 0x224   : > { %2775 = vmatpush3.bf16.msra.mxu0 %v3411_v55 }
 0x225   : > { %2800 = vmatprep.subr.bf16.mxu0 %v2972_v8 }
 0x2da   : > { %v2456_v60 = vpop.f32.mrb[0].mxu0 }
 0x2db   : > { %v1327_v62 = vpop.f32.mrb[1].mxu0 }
 0x2dc   : > { %v1352_v63 = vadd.f32 %v1351_v59, %v1327_v62 }
 0x2de   : > { %v1353_v0 = vmul.f32 %v1352_v63, %v1350_v61  ;;  %v2459_v1 = vpop.f32.mrb[2].mxu0 }
 0x2df   : > { %v1337_v2 = vpop.f32.mrb[3].mxu0 }
 0x2e0   : > { %vm1459_vm5 = vcmp.gt.f32.partialorder %v1353_v0, 1.0  ;;  %v1463_v3 = vmul.f32 0.95, %v1353_v0 }
 0x2e1   : > { %v2041_v4 = vsel %vm1459_vm5, 1.0, %v2974_v56  ;;  %2493 = vmatmul.mubr.msk.f32.vlgmr.msra.gmra.mrb[0].mxu1 %vm1459_vm5, %v2975_v5 }
 0x2e2   : > { %v1462_v6 = vsub.f32 1.0, %v2041_v4  ;;  %v1464_v7 = vadd.f32 %v2456_v60, %v1463_v3  ;;  %2778 = vmatpush3.bf16.msra.mxu1 %v3365_v20  ;;  %2562 = vmatprep.mubr.msk.f32.mxu1 %vm2973_vm3, %v2974_v56 }
 0x2e3   : > { %2779 = vmatprep.subr.bf16.mxu1 %v2972_v8 }
 0x2e4   : > { %v1465_v9 = vmul.f32 %v1464_v7, %v1462_v6 }
 0x2e6   : > { %2781 = vmatpush3.bf16.msra.mxu1 %v3368_v24  ;;  %vm1467_vm6 = vcmp.gt.f32.partialorder %v1465_v9, 1.0  ;;  %v1577_v10 = vmul.f32 0.95, %v1465_v9 }
 0x2e7   : > { %2782 = vmatprep.subr.bf16.mxu1 %v2972_v8  ;;  %2528 = vmatmul.mubr.msk.f32.vlgmr.msra.gmra.mrb[4].mxu0 %vm1467_vm6, %v2975_v5  ;;  %v2048_v11 = vsel %vm1467_vm6, 1.0, %v2974_v56 }
 0x2e8   : > { %2802 = vmatpush3.bf16.msra.mxu0 %v3365_v20  ;;  %v1576_v12 = vsub.f32 1.0, %v2048_v11  ;;  %v1578_v13 = vadd.f32 %v1577_v10, %v1337_v2  ;;  %2597 = vmatprep.mubr.msk.f32.mxu0 %vm2973_vm3, %v2974_v56  ;;  %v1444_v20 = vld [vmem:[#allocation5] sm:$0xff] }
 0x2e9   : > { %2803 = vmatprep.subr.bf16.mxu0 %v2972_v8  ;;  %vm1445_vm9 = vcmp.gt.f32.partialorder %v1444_v20, 1.0  ;;  %v1449_v22 = vmul.f32 0.95, %v1444_v20 }
 0x2ea   : > { %2784 = vmatpush3.bf16.msra.mxu1 %v3372_v30  ;;  %v1579_v14 = vmul.f32 %v1578_v13, %v1576_v12  ;;  %v2039_v21 = vsel %vm1445_vm9, 1.0, %v2974_v56 }
 0x2eb   : > { %2785 = vmatprep.subr.bf16.mxu1 %v2972_v8  ;;  %v1448_v23 = vsub.f32 1.0, %v2039_v21 }
 0x2ec   : > { %2805 = vmatpush3.bf16.msra.mxu0 %v3368_v24  ;;  %vm1581_vm7 = vcmp.gt.f32.partialorder %v1579_v14, 1.0  ;;  %v1691_v15 = vmul.f32 0.95, %v1579_v14 }
 0x2ed   : > { %2806 = vmatprep.subr.bf16.mxu0 %v2972_v8  ;;  %v2055_v16 = vsel %vm1581_vm7, 1.0, %v2974_v56 }
 0x2ee   : > { %2787 = vmatpush3.bf16.msra.mxu1 %v3376_v36  ;;  %v1690_v17 = vsub.f32 1.0, %v2055_v16  ;;  %v1692_v18 = vadd.f32 %v2459_v1, %v1691_v15 }
 0x2ef   : > { %2788 = vmatprep.subr.bf16.mxu1 %v2972_v8 }
 0x2f0   : > { %2808 = vmatpush3.bf16.msra.mxu0 %v3372_v30  ;;  %v1693_v19 = vmul.f32 %v1692_v18, %v1690_v17 }
 0x2f1   : > { %2809 = vmatprep.subr.bf16.mxu0 %v2972_v8 }
 0x2f2   : > { %2790 = vmatpush3.bf16.msra.mxu1 %v3380_v42  ;;  %1694 = vst [vmem:[#allocation4] sm:$0xff] %v1693_v19  ;;  %vm1695_vm8 = vcmp.gt.f32.partialorder %v1693_v19, 1.0 }
 0x2f3   : > { %2791 = vmatprep.subr.bf16.mxu1 %v2972_v8 }
 0x2f4   : > { %2811 = vmatpush3.bf16.msra.mxu0 %v3376_v36 }
 0x2f5   : > { %2812 = vmatprep.subr.bf16.mxu0 %v2972_v8 }
 0x2f6   : > { %2793 = vmatpush3.bf16.msra.mxu1 %v3384_v46 }
 0x2f7   : > { %2794 = vmatprep.subr.bf16.mxu1 %v2972_v8 }
 0x2f8   : > { %2814 = vmatpush3.bf16.msra.mxu0 %v3380_v42 }
 0x2f9   : > { %2815 = vmatprep.subr.bf16.mxu0 %v2972_v8 }
 0x2fa   : > { %2796 = vmatpush3.bf16.msra.mxu1 %v3388_v49 }
 0x2fb   : > { %2797 = vmatprep.subr.bf16.mxu1 %v2972_v8 }
 0x2fc   : > { %2817 = vmatpush3.bf16.msra.mxu0 %v3384_v46 }
 0x2fd   : > { %2818 = vmatprep.subr.bf16.mxu0 %v2972_v8 }
 0x2fe   : > { %2799 = vmatpush3.bf16.msra.mxu1 %v3411_v55 }
 0x300   : > { %2820 = vmatpush3.bf16.msra.mxu0 %v3388_v49 }
 0x301   : > { %2563 = vmatmul.mubr.msk.f32.vlgmr.msra.gmra.mrb[2].mxu1 %vm1581_vm7, %v2975_v5  ;;  %2821 = vmatprep.subr.bf16.mxu0 %v2972_v8 }
 0x304   : > { %2823 = vmatpush3.bf16.msra.mxu0 %v3411_v55 }
 0x307   : > { %2598 = vmatmul.mubr.msk.f32.vlgmr.msra.gmra.mrb[6].mxu0 %vm1695_vm8, %v2975_v5 }
 0x3b4   : > { %v1440_v24 = vpop.f32.mrb[0].mxu1 }
 0x3b5   : > { %v1450_v25 = vadd.f32 %v1449_v22, %v1440_v24  ;;  %v2494_v26 = vpop.f32.mrb[1].mxu1 }
 0x3b7   : > { %v1451_v27 = vmul.f32 %v1450_v25, %v1448_v23 }
 0x3b9   : > { %vm1453_vm10 = vcmp.gt.f32.partialorder %v1451_v27, 1.0  ;;  %1457 = vst [vmem:[%s3075_s17] sm:$0xff] %v1451_v27  ;;  %v1561_v8 = vmul.f32 0.95, %v1451_v27 }
 0x3ba   : > { %v2040_v28 = vsel %vm1453_vm10, 1.0, %v2974_v56  ;;  %v1552_v29 = vpop.f32.mrb[4].mxu0 }
 0x3bb   : > { %1456 = vst [vmem:[%s3073_s16] sm:$0xff] %v2040_v28  ;;  %v1560_v30 = vsub.f32 1.0, %v2040_v28  ;;  %v1562_v31 = vadd.f32 %v1561_v8, %v1552_v29  ;;  %v2529_v32 = vpop.f32.mrb[5].mxu0 }
 0x3bd   : > { %v1563_v33 = vmul.f32 %v1562_v31, %v1560_v30 }
 0x3bf   : > { %vm1565_vm11 = vcmp.gt.f32.partialorder %v1563_v33, 1.0  ;;  %2047 = vst [vmem:[%s3075_s17 + $0x8] sm:$0xff] %v1563_v33  ;;  %v1675_v35 = vmul.f32 0.95, %v1563_v33 }
 0x3c0   : > { %v2045_v34 = vsel %vm1565_vm11, 1.0, %v2974_v56 }
 0x3c1   : > { %2046 = vst [vmem:[%s3073_s16 + $0x8] sm:$0xff] %v2045_v34  ;;  %v1674_v37 = vsub.f32 1.0, %v2045_v34 }
 0x3d4   : > { %v1666_v36 = vpop.f32.mrb[2].mxu1 }
 0x3d5   : > { %v1676_v38 = vadd.f32 %v1675_v35, %v1666_v36  ;;  %v2564_v39 = vpop.f32.mrb[3].mxu1 }
 0x3d7   : > { %v1677_v40 = vmul.f32 %v1676_v38, %v1674_v37 }
 0x3d9   : > { %vm1679_vm12 = vcmp.gt.f32.partialorder %v1677_v40, 1.0  ;;  %2054 = vst [vmem:[%s3075_s17 + $0x10] sm:$0xff] %v1677_v40  ;;  %v1789_v41 = vmul.f32 0.95, %v1677_v40 }
 0x3da   : > { %v2052_v42 = vsel %vm1679_vm12, 1.0, %v2974_v56  ;;  %v1780_v43 = vpop.f32.mrb[6].mxu0 }
 0x3db   : > { %2053 = vst [vmem:[%s3073_s16 + $0x10] sm:$0xff] %v2052_v42  ;;  %v1788_v44 = vsub.f32 1.0, %v2052_v42  ;;  %v1790_v45 = vadd.f32 %v1789_v41, %v1780_v43  ;;  %v2599_v46 = vpop.f32.mrb[7].mxu0 }
 0x3dd   : > { %v1791_v47 = vmul.f32 %v1790_v45, %v1788_v44 }
 0x3df   : > { %1792 = vst [vmem:[#allocation5] sm:$0xff] %v1791_v47  ;;  %vm1793_vm13 = vcmp.gt.f32.partialorder %v1791_v47, 1.0  ;;  %2061 = vst [vmem:[%s3075_s17 + $0x18] sm:$0xff] %v1791_v47 }
 0x3e0   : > { %v2059_v48 = vsel %vm1793_vm13, 1.0, %v2974_v56 }
 0x3e1   : > { %2888 = shalt.err (!%p2885_p4)
}
 0x3e2   : > { %s2889_s17 = scalar_lea.hbm %s3477_s26, 512  ;;  %s2893_s25 = scalar_lea.hbm %s3568_s6, 1024 }
 0x3e3   : > { %p2890_p7 = scmp.ne.s32.totalorder %s3477_s26, %s2889_s17  ;;  %p2894_p10 = scmp.lt.u32.totalorder %s3477_s26, %s3568_s6 }
 0x3e4   : > { %p2895_p11 = scmp.lt.u32.totalorder %s2893_s25, %s2889_s17  ;;  %p2897_p13 = scmp.lt.u32.totalorder %s2889_s17, %s3477_s26 }
 0x3e5   : > { %p2891_p8 = pnand %p2890_p7, %p3053_p5 }
 0x3e6   : > { %p2896_p12 = por %p2895_p11, %p2894_p10 }
 0x3e7   : > { %p2892_p9 = pneg %p2891_p8 }
 0x3e8   : > { %p2898_p0 = por %p2897_p13, %p2896_p12 }
 0x3ea   : > { %p2899_p1 = pnand %p2898_p0, %p2892_p9 }
 0x3ec   : > { %2902 = shalt.err (!%p2899_p1)
}
 0x3ed   : > { %s2977_s11 = smov 128   ;;  %s2978_s13 = smov 8   ;;  %2060 = vst [vmem:[%s3073_s16 + $0x18] sm:$0xff] %v2059_v48 }
 0x3ee   : > { %2825 = dma.vmem_to_hbm [thread:$0]  (%p3053_p5), %s3479_s14, 512, %s3477_s26, %s1806_s10, %s2977_s11, %s2977_s11, %s2978_s13  }
 0x3ef   : > { %s1801_s19 = scalar_lea.sflag [#allocation7], %s3064_s9  ;;  %s2903_s17 = scalar_lea.vmem %s3487_s18, 512 }
 0x3f0   : > { %p2904_p2 = scmp.ne.s32.totalorder %s3487_s18, %s2903_s17  ;;  %s2979_s15 = smov [#allocation6]  }
 0x3f1   : > { %s2907_s20 = sshll.u32 %s2979_s15, 4  ;;  %s2908_s20 = int_to_ptr.vmem [resolvable:$false] %s2907_s20 }
 0x3f2   : > { %p2905_p3 = pnand %p2904_p2, %p3053_p5  ;;  %s2909_s25 = scalar_lea.vmem %s2908_s20, 1024 }
 0x3f3   : > { %p2910_p7 = scmp.lt.s32.totalorder %s3487_s18, %s2908_s20  ;;  %p2911_p8 = scmp.lt.s32.totalorder %s2909_s25, %s2903_s17 }
 0x3f4   : > { %p2906_p4 = pneg %p2905_p3 }
 0x3f5   : > { %p2912_p9 = por %p2911_p8, %p2910_p7 }
 0x3f7   : > { %p2913_p10 = pnand %p2912_p9, %p2906_p4 }
 0x3f9   : > { %2916 = shalt.err (!%p2913_p10)
}
 0x3fa   : > { %s2917_s16 = scalar_lea.hbm %s3485_s29, 512  ;;  %s2921_s10 = scalar_lea.hbm %s3567_s5, 1024 }
 0x3fb   : > { %p2918_p11 = scmp.ne.s32.totalorder %s3485_s29, %s2917_s16  ;;  %p2922_p0 = scmp.lt.u32.totalorder %s3485_s29, %s3567_s5 }
 0x3fc   : > { %p2923_p1 = scmp.lt.u32.totalorder %s2921_s10, %s2917_s16  ;;  %p2925_p3 = scmp.lt.u32.totalorder %s2917_s16, %s3485_s29 }
 0x3fd   : > { %p2919_p12 = pnand %p2918_p11, %p3053_p5 }
 0x3fe   : > { %p2924_p2 = por %p2923_p1, %p2922_p0 }
 0x3ff   : > { %p2920_p13 = pneg %p2919_p12 }
 0x400   : > { %p2926_p4 = por %p2925_p3, %p2924_p2 }
 0x402   : > { %p2927_p7 = pnand %p2926_p4, %p2920_p13 }
 0x404   : > { %2930 = shalt.err (!%p2927_p7)
}
 0x405   : > { %2824 = dma.vmem_to_hbm [thread:$0]  (%p3053_p5), %s3487_s18, 512, %s3485_s29, %s1801_s19, %s2977_s11, %s2977_s11, %s2978_s13  }
 0x406 PF: > { %p2835_p8 = scmp.ge.s32.totalorder %s2969_s24, 2  ;;  %s1850_s17 = sand.u32 1, %s2957_s21  }
 0x407   : > { %s1851_s15 = scalar_lea.sflag [#allocation7], %s1850_s17 }
 0x408   : > { %p2829_p9 = pnand %p2835_p8, %p3057_p6 }
 0x40a   : > { %2948 = dma.done.wait (!%p2829_p9), %s1851_s15, 512  }
 0x40b   : > { %2950 = vsyncadd (!%p2829_p9), %s1851_s15, 4294966784  ;;  %s1860_s7 = scalar_lea.sflag [#allocation9], %s1850_s17 }
 0x40c   : > { %2952 = dma.done.wait (!%p2829_p9), %s1860_s7, 512  }
 0x40d   : > { %2954 = vsyncadd (!%p2829_p9), %s1860_s7, 4294966784  ;;  %p20_p5 = scmp.ge.s32.totalorder %s3040_s27, 4   ;;  %s3573_s21 = smov %s2961_s22 }
 0x40e   : > { %s3574_s22 = smov %s2965_s23  ;;  %s3575_s23 = smov %s3051_s30 }
 0x40f   : > { %s3576_s24 = smov %s3040_s27  ;;  %22 = sbr.rel (!%p20_p5) target bundleno = 5 (0x5), region = 102 }
 0x416   :  { %1865 = vsyncpa [#allocation7], 1 }
 0x417   :  { %1867 = vsyncpa [#allocation7 + $0x1], 1 }
 0x418   :  { %1868 = vsyncpa [#allocation9], 1 }
 0x419   :  { %1870 = vsyncpa [#allocation9 + $0x1], 1 }

</bundles_post_ra>
